<compile_context>
chip_gen: v5e
topology: v5e:2x2
jax: 0.10.0
libtpu: 0.0.40
codegen_flags: <defaults>
</compile_context>

<pallas_src>
import functools

import jax
import jax.numpy as jnp
from jax.experimental import pallas as pl
from jax.experimental.pallas import tpu as pltpu


def mlp_kernel(x_ref, w1_ref, b1_ref, w2_ref, b2_ref, o_ref):
    # x_ref : [tm, D_in]        f32 activation tile
    # w1_ref: [D_in, 512]       bf16 first Linear weight (in, out)
    # b1_ref: [1, 512]          f32
    # w2_ref: [512, Hp]         bf16 second Linear weight (in, out), lane-padded
    # b2_ref: [1, Hp]           f32
    # o_ref : [tm, Hp]          f32
    h = jnp.tanh(x_ref[...])                                    # nn.Tanh(), f32 on VPU/EUP
    h = jnp.dot(h.astype(jnp.bfloat16), w1_ref[...],
                preferred_element_type=jnp.float32) + b1_ref[...]
    h = jnp.tanh(h)                                             # nn.Tanh()
    y = jnp.dot(h.astype(jnp.bfloat16), w2_ref[...],
                preferred_element_type=jnp.float32) + b2_ref[...]
    o_ref[...] = y.astype(o_ref.dtype)


@functools.partial(jax.jit, static_argnames=("bert_layer", "tm"))
def mlp_forward(emb, w1, b1, w2, b2, *, bert_layer, tm=256):
    """emb: [B, L, 768] float32.  Returns {'embedding': [B, hidden_size]} (float32)."""
    B, L, d_bert = emb.shape
    d_in = d_bert * bert_layer
    d_mid = w1.shape[1]
    d_out = w2.shape[1]

    # ---- batch tile: fill the MXU M dim; clip to B; pad ragged batches.
    tm = max(8, min(tm, B))
    if tm != B:
        tm -= tm % 8                       # keep sublane-aligned unless it equals the full dim
    n_blk = -(-B // tm)                    # cdiv
    B_pad = n_blk * tm

    # ---- activation input: avoid materialising the slice+reshape in HBM when possible.
    col_off = (L - bert_layer) * d_bert    # element offset of the last `bert_layer` layers
    use_view = (col_off % d_in == 0)       # offset expressible as a whole column-block index
    if B_pad == B and use_view:
        x_in = emb.reshape(B, L * d_bert)  # contiguous -> layout-free reshape, no copy
        col_block = col_off // d_in
    else:
        # Ragged batch or non-block-aligned layer offset: materialise the slice once.
        # TODO(synk): element-offset BlockSpec to avoid this copy for non-aligned bert_layer.
        x_in = emb[:, L - bert_layer:, :].reshape(B, d_in)
        if B_pad != B:
            x_in = jnp.pad(x_in, ((0, B_pad - B), (0, 0)))
        col_block = 0

    # ---- lane-dense output: pad hidden_size up to a multiple of 128 with zero cols.
    d_out_p = -(-d_out // 128) * 128
    if d_out_p != d_out:
        w2 = jnp.pad(w2, ((0, 0), (0, d_out_p - d_out)))
        b2 = jnp.pad(b2, ((0, d_out_p - d_out),))

    # ---- weights as bf16 (halves weight DMA + VMEM), biases stay f32.
    w1_bf = w1.astype(jnp.bfloat16)
    w2_bf = w2.astype(jnp.bfloat16)
    b1_2d = b1.reshape(1, d_mid).astype(jnp.float32)
    b2_2d = b2.reshape(1, d_out_p).astype(jnp.float32)

    out = pl.pallas_call(
        mlp_kernel,
        out_shape=jax.ShapeDtypeStruct((B_pad, d_out_p), jnp.float32),
        grid_spec=pltpu.PrefetchScalarGridSpec(
            num_scalar_prefetch=0,
            grid=(n_blk,),
            in_specs=[
                # x tile per grid step; column block selects the last `bert_layer` layers.
                pl.BlockSpec((tm, d_in), lambda i: (i, col_block)),
                pl.BlockSpec((d_in, d_mid), lambda i: (0, 0)),      # W1 resident
                pl.BlockSpec((1, d_mid), lambda i: (0, 0)),         # b1
                pl.BlockSpec((d_mid, d_out_p), lambda i: (0, 0)),   # W2 resident
                pl.BlockSpec((1, d_out_p), lambda i: (0, 0)),       # b2
            ],
            out_specs=pl.BlockSpec((tm, d_out_p), lambda i: (i, 0)),
        ),
        compiler_params=pltpu.CompilerParams(
            dimension_semantics=("parallel",),                      # megacore-shardable batch axis
        ),
    )(x_in, w1_bf, b1_2d, w2_bf, b2_2d)

    return {"embedding": out[:B, :d_out]}


if __name__ == "__main__":
    # Small shapes consistent with the module:
    #   bert_layer=1  -> fc1 input dim = 768*1 = 768
    #   hidden_size=32, batch=8, total BERT layers in the input emb = 4
    bert_layer = 1
    hidden_size = 32
    B, L, D_BERT = 8, 4, 768
    d_in, d_mid = 768 * bert_layer, 512

    key = jax.random.PRNGKey(0)
    k_emb, k_w1, k_b1, k_w2, k_b2 = jax.random.split(key, 5)

    emb = jax.random.normal(k_emb, (B, L, D_BERT), dtype=jnp.float32)

    # Deterministic parameter init (weights stored as [in, out]).
    w1 = jax.random.normal(k_w1, (d_in, d_mid), dtype=jnp.float32) * 0.02
    b1 = jax.random.normal(k_b1, (d_mid,), dtype=jnp.float32) * 0.02
    w2 = jax.random.normal(k_w2, (d_mid, hidden_size), dtype=jnp.float32) * 0.02
    b2 = jax.random.normal(k_b2, (hidden_size,), dtype=jnp.float32) * 0.02

    out = mlp_forward(emb, w1, b1, w2, b2, bert_layer=bert_layer)
    rep = jax.block_until_ready(out["embedding"])

    # Pure-JAX f32 reference (same math, no Pallas).  bf16 matmul operands with f32
    # accumulation -> loosened tolerance vs. the pure-f32 reference.
    x_ref = emb[:, -bert_layer:, :].reshape(B, -1)
    ref = jnp.tanh(jnp.tanh(x_ref) @ w1 + b1) @ w2 + b2
    assert rep.shape == (B, hidden_size)
    assert jnp.allclose(rep, ref, atol=2e-2, rtol=2e-2), "mismatch vs reference"

    print("KERNEL_OK")
</pallas_src>

<mosaic_0001>
module attributes {stable_mosaic.version = 11 : i64} {
  func.func @mlp_kernel(%arg0: i32, %arg1: memref<8x768xf32, #tpu.memory_space<vmem>>, %arg2: memref<768x512xbf16, #tpu.memory_space<vmem>>, %arg3: memref<1x512xf32, #tpu.memory_space<vmem>>, %arg4: memref<512x128xbf16, #tpu.memory_space<vmem>>, %arg5: memref<1x128xf32, #tpu.memory_space<vmem>>, %arg6: memref<8x128xf32, #tpu.memory_space<vmem>>) attributes {dimension_semantics = [#tpu.dimension_semantics<parallel>], iteration_bounds = array<i64: 1>, scalar_prefetch = 0 : i64, scratch_operands = 0 : i64, tpu.core_type = #tpu.core_type<tc>, window_params = [{transform_indices = @transform_0, window_bounds = array<i64: 8, 768>}, {pipeline_mode = #tpu.pipeline_mode<synchronous>, transform_indices = @transform_1, window_bounds = array<i64: 768, 512>}, {pipeline_mode = #tpu.pipeline_mode<synchronous>, transform_indices = @transform_2, window_bounds = array<i64: 1, 512>}, {pipeline_mode = #tpu.pipeline_mode<synchronous>, transform_indices = @transform_3, window_bounds = array<i64: 512, 128>}, {pipeline_mode = #tpu.pipeline_mode<synchronous>, transform_indices = @transform_4, window_bounds = array<i64: 1, 128>}, {transform_indices = @transform_5, window_bounds = array<i64: 8, 128>}]} {
    %c0 = arith.constant 0 : index
    %c0_0 = arith.constant 0 : index
    %0 = vector.load %arg1[%c0, %c0_0] : memref<8x768xf32, #tpu.memory_space<vmem>>, vector<8x768xf32>
    %1 = math.tanh %0 : vector<8x768xf32>
    %2 = arith.truncf %1 : vector<8x768xf32> to vector<8x768xbf16>
    %c0_1 = arith.constant 0 : index
    %c0_2 = arith.constant 0 : index
    %3 = vector.load %arg2[%c0_1, %c0_2] : memref<768x512xbf16, #tpu.memory_space<vmem>>, vector<768x512xbf16>
    %cst = arith.constant dense<0.000000e+00> : vector<8x512xf32>
    %4 = tpu.matmul %2, %3, %cst {dimension_numbers = #tpu.dot_dimension_numbers<[1], [0], [0], [1], [0, 0, 1, 1], [], []>} : vector<8x768xbf16>, vector<768x512xbf16>, vector<8x512xf32> -> vector<8x512xf32>
    %c0_3 = arith.constant 0 : index
    %c0_4 = arith.constant 0 : index
    %5 = vector.load %arg3[%c0_3, %c0_4] : memref<1x512xf32, #tpu.memory_space<vmem>>, vector<1x512xf32>
    %6 = vector.broadcast %5 : vector<1x512xf32> to vector<8x512xf32>
    %7 = arith.addf %4, %6 : vector<8x512xf32>
    %8 = math.tanh %7 : vector<8x512xf32>
    %9 = arith.truncf %8 : vector<8x512xf32> to vector<8x512xbf16>
    %c0_5 = arith.constant 0 : index
    %c0_6 = arith.constant 0 : index
    %10 = vector.load %arg4[%c0_5, %c0_6] : memref<512x128xbf16, #tpu.memory_space<vmem>>, vector<512x128xbf16>
    %cst_7 = arith.constant dense<0.000000e+00> : vector<8x128xf32>
    %11 = tpu.matmul %9, %10, %cst_7 {dimension_numbers = #tpu.dot_dimension_numbers<[1], [0], [0], [1], [0, 0, 1, 1], [], []>} : vector<8x512xbf16>, vector<512x128xbf16>, vector<8x128xf32> -> vector<8x128xf32>
    %c0_8 = arith.constant 0 : index
    %c0_9 = arith.constant 0 : index
    %12 = vector.load %arg5[%c0_8, %c0_9] : memref<1x128xf32, #tpu.memory_space<vmem>>, vector<1x128xf32>
    %13 = vector.broadcast %12 : vector<1x128xf32> to vector<8x128xf32>
    %14 = arith.addf %11, %13 : vector<8x128xf32>
    %c0_10 = arith.constant 0 : index
    %c0_11 = arith.constant 0 : index
    %15 = vector.load %arg6[%c0_10, %c0_11] : memref<8x128xf32, #tpu.memory_space<vmem>>, vector<8x128xf32>
    tpu.vector_store %arg6[%c0_10, %c0_11], %14 {strides = array<i32>} : memref<8x128xf32, #tpu.memory_space<vmem>>, vector<8x128xf32>,
    return
  }
  func.func @transform_0(%arg0: i32) -> (i32, i32) {
    %c3_i32 = arith.constant 3 : i32
    %c0_i32 = arith.constant 0 : i32
    return %arg0, %c3_i32 : i32, i32
  }
  func.func @transform_1(%arg0: i32) -> (i32, i32) {
    %c0_i32 = arith.constant 0 : i32
    %c0_i32_0 = arith.constant 0 : i32
    %c0_i32_1 = arith.constant 0 : i32
    return %c0_i32, %c0_i32_0 : i32, i32
  }
  func.func @transform_2(%arg0: i32) -> (i32, i32) {
    %c0_i32 = arith.constant 0 : i32
    %c0_i32_0 = arith.constant 0 : i32
    %c0_i32_1 = arith.constant 0 : i32
    return %c0_i32, %c0_i32_0 : i32, i32
  }
  func.func @transform_3(%arg0: i32) -> (i32, i32) {
    %c0_i32 = arith.constant 0 : i32
    %c0_i32_0 = arith.constant 0 : i32
    %c0_i32_1 = arith.constant 0 : i32
    return %c0_i32, %c0_i32_0 : i32, i32
  }
  func.func @transform_4(%arg0: i32) -> (i32, i32) {
    %c0_i32 = arith.constant 0 : i32
    %c0_i32_0 = arith.constant 0 : i32
    %c0_i32_1 = arith.constant 0 : i32
    return %c0_i32, %c0_i32_0 : i32, i32
  }
  func.func @transform_5(%arg0: i32) -> (i32, i32) {
    %c0_i32 = arith.constant 0 : i32
    %c0_i32_0 = arith.constant 0 : i32
    return %arg0, %c0_i32 : i32, i32
  }
}

</mosaic_0001>

<bundles_post_ra>
// kernel: mlp_forward.1
= control target key start
LH: loop header
LB: loop body
LE: loop exit
PB: predicated region body
PF: predicated region fallthrough
CT: control target
= control target key end

     0   :  { %s4375_s0 = inlined_call_operand.vmem [shape: f32[8,3072], index: 0, kind: input, shape index: {}]   ;;  %s4376_s1 = inlined_call_operand.vmem [shape: bf16[768,512], index: 1, kind: input, shape index: {}]   ;;  %s4377_s2 = inlined_call_operand.vmem [shape: f32[1,512], index: 2, kind: input, shape index: {}]   ;;  %s4378_s3 = inlined_call_operand.vmem [shape: bf16[512,128], index: 3, kind: input, shape index: {}]   ;;  %s4379_s4 = inlined_call_operand.vmem [shape: f32[1,128], index: 4, kind: input, shape index: {}]   ;;  %s4380_s5 = inlined_call_operand.hbm [shape: f32[8,128], index: 5, kind: output, shape index: {}]  }
   0x1   :  { %v1973_v0 = vld [vmem:[%s4376_s1 + $0xe0] sm:$0xf]  ;;  %v2785_v1 = vld [vmem:[%s4376_s1 + $0xec] sm:$0xf0] }
   0x2   :  { %v2101_v2 = vld [vmem:[%s4376_s1 + $0x1e0] sm:$0xf]  ;;  %v1974_v3 = vor.u32 %v2785_v1, %v1973_v0  ;;  %v2817_v4 = vld [vmem:[%s4376_s1 + $0x1ec] sm:$0xf0] }
   0x3   :  { %v2229_v5 = vld [vmem:[%s4376_s1 + $0x2e0] sm:$0xf]  ;;  %v2849_v6 = vld [vmem:[%s4376_s1 + $0x2ec] sm:$0xf0]  ;;  %v2102_v7 = vor.u32 %v2817_v4, %v2101_v2 }
   0x4   :  { %v2230_v8 = vor.u32 %v2849_v6, %v2229_v5  ;;  %v2357_v9 = vld [vmem:[%s4376_s1 + $0x3e0] sm:$0xf]  ;;  %v2881_v10 = vld [vmem:[%s4376_s1 + $0x3ec] sm:$0xf0]  ;;  %1204 = vmatpush.bf16.msra.mxu0 %v1974_v3 }
   0x5   :  { %v1957_v11 = vld [vmem:[%s4376_s1 + $0xc0] sm:$0xf]  ;;  %v2358_v12 = vor.u32 %v2881_v10, %v2357_v9  ;;  %v2781_v13 = vld [vmem:[%s4376_s1 + $0xcc] sm:$0xf0]  ;;  %1217 = vmatpush.bf16.msra.mxu1 %v2102_v7 }
   0x6   :  { %v2085_v14 = vld [vmem:[%s4376_s1 + $0x1c0] sm:$0xf]  ;;  %v2813_v15 = vld [vmem:[%s4376_s1 + $0x1cc] sm:$0xf0]  ;;  %1230 = vmatpush.bf16.msra.mxu2 %v2230_v8  ;;  %v1958_v16 = vor.u32 %v2781_v13, %v1957_v11 }
   0x7   :  { %v2086_v17 = vor.u32 %v2813_v15, %v2085_v14  ;;  %v2213_v18 = vld [vmem:[%s4376_s1 + $0x2c0] sm:$0xf]  ;;  %v2845_v19 = vld [vmem:[%s4376_s1 + $0x2cc] sm:$0xf0]  ;;  %1243 = vmatpush.bf16.msra.mxu3 %v2358_v12 }
   0x8   :  { %v2341_v20 = vld [vmem:[%s4376_s1 + $0x3c0] sm:$0xf]  ;;  %v2214_v21 = vor.u32 %v2845_v19, %v2213_v18  ;;  %v2877_v22 = vld [vmem:[%s4376_s1 + $0x3cc] sm:$0xf0]  ;;  %1205 = vmatpush.bf16.msra.mxu0 %v1958_v16 }
   0x9   :  { %v1941_v23 = vld [vmem:[%s4376_s1 + $0xa0] sm:$0xf]  ;;  %v2777_v24 = vld [vmem:[%s4376_s1 + $0xac] sm:$0xf0]  ;;  %v2342_v25 = vor.u32 %v2877_v22, %v2341_v20  ;;  %1218 = vmatpush.bf16.msra.mxu1 %v2086_v17 }
   0xa   :  { %v2069_v26 = vld [vmem:[%s4376_s1 + $0x1a0] sm:$0xf]  ;;  %v2809_v27 = vld [vmem:[%s4376_s1 + $0x1ac] sm:$0xf0]  ;;  %v1942_v29 = vor.u32 %v2777_v24, %v1941_v23  ;;  %1231 = vmatpush.bf16.msra.mxu2 %v2214_v21 }
   0xb   :  { %v2197_v28 = vld [vmem:[%s4376_s1 + $0x2a0] sm:$0xf]  ;;  %v2841_v30 = vld [vmem:[%s4376_s1 + $0x2ac] sm:$0xf0]  ;;  %v2070_v33 = vor.u32 %v2809_v27, %v2069_v26  ;;  %1244 = vmatpush.bf16.msra.mxu3 %v2342_v25 }
   0xc   :  { %v2325_v31 = vld [vmem:[%s4376_s1 + $0x3a0] sm:$0xf]  ;;  %v2873_v32 = vld [vmem:[%s4376_s1 + $0x3ac] sm:$0xf0]  ;;  %v2198_v34 = vor.u32 %v2841_v30, %v2197_v28  ;;  %1206 = vmatpush.bf16.msra.mxu0 %v1942_v29 }
   0xd   :  { %v1925_v35 = vld [vmem:[%s4376_s1 + $0x80] sm:$0xf]  ;;  %v2773_v36 = vld [vmem:[%s4376_s1 + $0x8c] sm:$0xf0]  ;;  %v2326_v38 = vor.u32 %v2873_v32, %v2325_v31  ;;  %1219 = vmatpush.bf16.msra.mxu1 %v2070_v33  ;;  %v2783_v33 = vld [vmem:[%s4376_s1 + $0xe4] sm:$0xf] }
   0xe   :  { %v2053_v37 = vld [vmem:[%s4376_s1 + $0x180] sm:$0xf]  ;;  %v2805_v39 = vld [vmem:[%s4376_s1 + $0x18c] sm:$0xf0]  ;;  %v1926_v44 = vor.u32 %v2773_v36, %v1925_v35  ;;  %1232 = vmatpush.bf16.msra.mxu2 %v2198_v34  ;;  %v1975_v34 = vld [vmem:[%s4376_s1 + $0xf0] sm:$0xf0] }
   0xf   :  { %v2181_v40 = vld [vmem:[%s4376_s1 + $0x280] sm:$0xf]  ;;  %v2837_v41 = vld [vmem:[%s4376_s1 + $0x28c] sm:$0xf0]  ;;  %v2054_v45 = vor.u32 %v2805_v39, %v2053_v37  ;;  %1245 = vmatpush.bf16.msra.mxu3 %v2326_v38  ;;  %v2815_v37 = vld [vmem:[%s4376_s1 + $0x1e4] sm:$0xf] }
  0x10   :  { %v2309_v42 = vld [vmem:[%s4376_s1 + $0x380] sm:$0xf]  ;;  %v2869_v43 = vld [vmem:[%s4376_s1 + $0x38c] sm:$0xf0]  ;;  %v2182_v46 = vor.u32 %v2837_v41, %v2181_v40  ;;  %1207 = vmatpush.bf16.msra.mxu0 %v1926_v44  ;;  %v2103_v38 = vld [vmem:[%s4376_s1 + $0x1f0] sm:$0xf0] }
  0x11   :  { %v1909_v47 = vld [vmem:[%s4376_s1 + $0x60] sm:$0xf]  ;;  %v2769_v48 = vld [vmem:[%s4376_s1 + $0x6c] sm:$0xf0]  ;;  %v2310_v50 = vor.u32 %v2869_v43, %v2309_v42  ;;  %1220 = vmatpush.bf16.msra.mxu1 %v2054_v45  ;;  %v1978_v42 = vor.u32 %v2783_v33, %v1975_v34 }
  0x12   :  { %v2037_v49 = vld [vmem:[%s4376_s1 + $0x160] sm:$0xf]  ;;  %v2801_v51 = vld [vmem:[%s4376_s1 + $0x16c] sm:$0xf0]  ;;  %v1910_v56 = vor.u32 %v2769_v48, %v1909_v47  ;;  %1233 = vmatpush.bf16.msra.mxu2 %v2182_v46  ;;  %v2106_v46 = vor.u32 %v2815_v37, %v2103_v38  ;;  %v2779_v48 = vld [vmem:[%s4376_s1 + $0xc4] sm:$0xf] }
  0x13   :  { %v2165_v52 = vld [vmem:[%s4376_s1 + $0x260] sm:$0xf]  ;;  %v2833_v53 = vld [vmem:[%s4376_s1 + $0x26c] sm:$0xf0]  ;;  %v2038_v57 = vor.u32 %v2801_v51, %v2037_v49  ;;  %1246 = vmatpush.bf16.msra.mxu3 %v2310_v50  ;;  %v1959_v49 = vld [vmem:[%s4376_s1 + $0xd0] sm:$0xf0] }
  0x14   :  { %v2293_v54 = vld [vmem:[%s4376_s1 + $0x360] sm:$0xf]  ;;  %v2865_v55 = vld [vmem:[%s4376_s1 + $0x36c] sm:$0xf0]  ;;  %v2166_v58 = vor.u32 %v2833_v53, %v2165_v52  ;;  %1208 = vmatpush.bf16.msra.mxu0 %v1910_v56  ;;  %v2811_v50 = vld [vmem:[%s4376_s1 + $0x1c4] sm:$0xf] }
  0x15   :  { %v1893_v59 = vld [vmem:[%s4376_s1 + $0x40] sm:$0xf]  ;;  %v2765_v60 = vld [vmem:[%s4376_s1 + $0x4c] sm:$0xf0]  ;;  %v2294_v62 = vor.u32 %v2865_v55, %v2293_v54  ;;  %1221 = vmatpush.bf16.msra.mxu1 %v2038_v57  ;;  %v2087_v51 = vld [vmem:[%s4376_s1 + $0x1d0] sm:$0xf0]  ;;  %v1962_v54 = vor.u32 %v2779_v48, %v1959_v49 }
  0x16   :  { %v2021_v61 = vld [vmem:[%s4376_s1 + $0x140] sm:$0xf]  ;;  %v2797_v63 = vld [vmem:[%s4376_s1 + $0x14c] sm:$0xf0]  ;;  %v1894_v4 = vor.u32 %v2765_v60, %v1893_v59  ;;  %1234 = vmatpush.bf16.msra.mxu2 %v2166_v58  ;;  %v2090_v58 = vor.u32 %v2811_v50, %v2087_v51  ;;  %v2775_v60 = vld [vmem:[%s4376_s1 + $0xa4] sm:$0xf] }
  0x17   :  { %v2149_v0 = vld [vmem:[%s4376_s1 + $0x240] sm:$0xf]  ;;  %v2829_v1 = vld [vmem:[%s4376_s1 + $0x24c] sm:$0xf0]  ;;  %v2022_v5 = vor.u32 %v2797_v63, %v2021_v61  ;;  %1247 = vmatpush.bf16.msra.mxu3 %v2294_v62  ;;  %v1943_v61 = vld [vmem:[%s4376_s1 + $0xb0] sm:$0xf0] }
  0x18   :  { %v2277_v2 = vld [vmem:[%s4376_s1 + $0x340] sm:$0xf]  ;;  %v2861_v3 = vld [vmem:[%s4376_s1 + $0x34c] sm:$0xf0]  ;;  %v2150_v6 = vor.u32 %v2829_v1, %v2149_v0  ;;  %1209 = vmatpush.bf16.msra.mxu0 %v1894_v4  ;;  %v2807_v62 = vld [vmem:[%s4376_s1 + $0x1a4] sm:$0xf] }
  0x19   :  { %v1877_v7 = vld [vmem:[%s4376_s1 + $0x20] sm:$0xf]  ;;  %v2761_v8 = vld [vmem:[%s4376_s1 + $0x2c] sm:$0xf0]  ;;  %v2278_v10 = vor.u32 %v2861_v3, %v2277_v2  ;;  %1222 = vmatpush.bf16.msra.mxu1 %v2022_v5  ;;  %v2071_v63 = vld [vmem:[%s4376_s1 + $0x1b0] sm:$0xf0] }
  0x1a   :  { %v2005_v9 = vld [vmem:[%s4376_s1 + $0x120] sm:$0xf]  ;;  %v2793_v11 = vld [vmem:[%s4376_s1 + $0x12c] sm:$0xf0]  ;;  %v1878_v16 = vor.u32 %v2761_v8, %v1877_v7  ;;  %1235 = vmatpush.bf16.msra.mxu2 %v2150_v6  ;;  %v1946_v6 = vor.u32 %v2775_v60, %v1943_v61  ;;  %v1854_v8 = vld [vmem:[%s4375_s0 + $0x98] sm:$0xff] }
  0x1b   :  { %v2133_v12 = vld [vmem:[%s4376_s1 + $0x220] sm:$0xf]  ;;  %v2825_v13 = vld [vmem:[%s4376_s1 + $0x22c] sm:$0xf0]  ;;  %v2006_v19 = vor.u32 %v2793_v11, %v2005_v9  ;;  %1248 = vmatpush.bf16.msra.mxu3 %v2278_v10  ;;  %v1856_v9 = vld [vmem:[%s4375_s0 + $0xa8] sm:$0xff]  ;;  %v2074_v10 = vor.u32 %v2807_v62, %v2071_v63 }
  0x1c   :  { %v2261_v14 = vld [vmem:[%s4376_s1 + $0x320] sm:$0xf]  ;;  %v2857_v15 = vld [vmem:[%s4376_s1 + $0x32c] sm:$0xf0]  ;;  %v2134_v20 = vor.u32 %v2825_v13, %v2133_v12  ;;  %1210 = vmatpush.bf16.msra.mxu0 %v1878_v16  ;;  %v2771_v12 = vld [vmem:[%s4376_s1 + $0x84] sm:$0xf] }
  0x1d   :  { %v1861_v17 = vld [vmem:[%s4376_s1] sm:$0xf]  ;;  %v2757_v18 = vld [vmem:[%s4376_s1 + $0xc] sm:$0xf0]  ;;  %v2262_v24 = vor.u32 %v2857_v15, %v2261_v14  ;;  %1223 = vmatpush.bf16.msra.mxu1 %v2006_v19  ;;  %v1927_v13 = vld [vmem:[%s4376_s1 + $0x90] sm:$0xf0] }
  0x1e   :  { %v1989_v21 = vld [vmem:[%s4376_s1 + $0x100] sm:$0xf]  ;;  %v2789_v22 = vld [vmem:[%s4376_s1 + $0x10c] sm:$0xf0]  ;;  %v1862_v31 = vor.u32 %v2757_v18, %v1861_v17  ;;  %1236 = vmatpush.bf16.msra.mxu2 %v2134_v20  ;;  %v2803_v14 = vld [vmem:[%s4376_s1 + $0x184] sm:$0xf]  ;;  %v1930_v18 = vor.u32 %v2771_v12, %v1927_v13 }
  0x1f   :  { %v2117_v23 = vld [vmem:[%s4376_s1 + $0x200] sm:$0xf]  ;;  %v2821_v25 = vld [vmem:[%s4376_s1 + $0x20c] sm:$0xf0]  ;;  %v1990_v35 = vor.u32 %v2789_v22, %v1989_v21  ;;  %1249 = vmatpush.bf16.msra.mxu3 %v2262_v24  ;;  %v2055_v15 = vld [vmem:[%s4376_s1 + $0x190] sm:$0xf0] }
  0x20   :  { %v2245_v26 = vld [vmem:[%s4376_s1 + $0x300] sm:$0xf]  ;;  %v2853_v27 = vld [vmem:[%s4376_s1 + $0x30c] sm:$0xf0]  ;;  %v2118_v36 = vor.u32 %v2821_v25, %v2117_v23  ;;  %1211 = vmatpush.bf16.msra.mxu0 %v1862_v31  ;;  %v2058_v22 = vor.u32 %v2803_v14, %v2055_v15  ;;  %v2767_v24 = vld [vmem:[%s4376_s1 + $0x64] sm:$0xf] }
  0x21   :  { %v2485_v28 = vld [vmem:[%s4376_s1 + $0x4e0] sm:$0xf]  ;;  %v2913_v29 = vld [vmem:[%s4376_s1 + $0x4ec] sm:$0xf0]  ;;  %v2246_v39 = vor.u32 %v2853_v27, %v2245_v26  ;;  %1224 = vmatpush.bf16.msra.mxu1 %v1990_v35  ;;  %v1911_v25 = vld [vmem:[%s4376_s1 + $0x70] sm:$0xf0] }
  0x22   :  { %v2613_v30 = vld [vmem:[%s4376_s1 + $0x5e0] sm:$0xf]  ;;  %v2945_v32 = vld [vmem:[%s4376_s1 + $0x5ec] sm:$0xf0]  ;;  %v2486_v40 = vor.u32 %v2913_v29, %v2485_v28  ;;  %1237 = vmatpush.bf16.msra.mxu2 %v2118_v36  ;;  %v2799_v27 = vld [vmem:[%s4376_s1 + $0x164] sm:$0xf]  ;;  %v1914_v34 = vor.u32 %v2767_v24, %v1911_v25 }
  0x23   :  { %v2614_v41 = vor.u32 %v2945_v32, %v2613_v30  ;;  %v2469_v43 = vld [vmem:[%s4376_s1 + $0x4c0] sm:$0xf]  ;;  %v2909_v44 = vld [vmem:[%s4376_s1 + $0x4cc] sm:$0xf0]  ;;  %1250 = vmatpush.bf16.msra.mxu3 %v2246_v39  ;;  %v2039_v28 = vld [vmem:[%s4376_s1 + $0x170] sm:$0xf0] }
  0x24   :  { %v2597_v45 = vld [vmem:[%s4376_s1 + $0x5c0] sm:$0xf]  ;;  %v2941_v47 = vld [vmem:[%s4376_s1 + $0x5cc] sm:$0xf0]  ;;  %1256 = vmatpush.bf16.msrb.mxu0 %v2486_v40  ;;  %v2470_v52 = vor.u32 %v2909_v44, %v2469_v43  ;;  %v2042_v40 = vor.u32 %v2799_v27, %v2039_v28  ;;  %v1895_v43 = vld [vmem:[%s4376_s1 + $0x50] sm:$0xf0] }
  0x25   :  { %1269 = vmatpush.bf16.msrb.mxu1 %v2614_v41  ;;  %v2598_v53 = vor.u32 %v2941_v47, %v2597_v45  ;;  %v2453_v55 = vld [vmem:[%s4376_s1 + $0x4a0] sm:$0xf]  ;;  %v2905_v56 = vld [vmem:[%s4376_s1 + $0x4ac] sm:$0xf0]  ;;  %v2795_v45 = vld [vmem:[%s4376_s1 + $0x144] sm:$0xf] }
  0x26   :  { %1282 = vmatpush.bf16.msrb.mxu2 %v1978_v42  ;;  %v2581_v57 = vld [vmem:[%s4376_s1 + $0x5a0] sm:$0xf]  ;;  %v2937_v59 = vld [vmem:[%s4376_s1 + $0x5ac] sm:$0xf0]  ;;  %v2454_v1 = vor.u32 %v2905_v56, %v2453_v55  ;;  %v2763_v42 = vld [vmem:[%s4376_s1 + $0x44] sm:$0xf] }
  0x27   :  { %1295 = vmatpush.bf16.msrb.mxu3 %v2106_v46  ;;  %v2437_v0 = vld [vmem:[%s4376_s1 + $0x480] sm:$0xf]  ;;  %v2901_v2 = vld [vmem:[%s4376_s1 + $0x48c] sm:$0xf0]  ;;  %v2582_v5 = vor.u32 %v2937_v59, %v2581_v57  ;;  %v2023_v46 = vld [vmem:[%s4376_s1 + $0x150] sm:$0xf0]  ;;  %v1898_v51 = vor.u32 %v2763_v42, %v1895_v43 }
  0x28   :  { %1257 = vmatpush.bf16.msrb.mxu0 %v2470_v52  ;;  %v1853_v3 = vld [vmem:[%s4375_s0 + $0x90] sm:$0xff]  ;;  %v1855_v4 = vld [vmem:[%s4375_s0 + $0xa0] sm:$0xff]  ;;  %v2438_v16 = vor.u32 %v2901_v2, %v2437_v0  ;;  %v2026_v55 = vor.u32 %v2795_v45, %v2023_v46  ;;  %v1858_v61 = vld [vmem:[%s4375_s0 + $0xb8] sm:$0xff] }
  0x29   :  { %1270 = vmatpush.bf16.msrb.mxu1 %v2598_v53  ;;  %v2565_v7 = vld [vmem:[%s4376_s1 + $0x580] sm:$0xf]  ;;  %2981 = vtanh.f32 %v1853_v3  ;;  %v2933_v11 = vld [vmem:[%s4376_s1 + $0x58c] sm:$0xf0]  ;;  %v2759_v57 = vld [vmem:[%s4376_s1 + $0x24] sm:$0xf] }
  0x2a   :  { %1283 = vmatpush.bf16.msrb.mxu2 %v1962_v54  ;;  %2983 = vtanh.f32 %v1855_v4  ;;  %v2566_v17 = vor.u32 %v2933_v11, %v2565_v7  ;;  %v2421_v19 = vld [vmem:[%s4376_s1 + $0x460] sm:$0xf]  ;;  %v2897_v20 = vld [vmem:[%s4376_s1 + $0x46c] sm:$0xf0]  ;;  %v2791_v59 = vld [vmem:[%s4376_s1 + $0x124] sm:$0xf] }
  0x2b   :  { %1296 = vmatpush.bf16.msrb.mxu3 %v2090_v58  ;;  %2985 = vtanh.f32 %v1854_v8  ;;  %v2549_v21 = vld [vmem:[%s4376_s1 + $0x560] sm:$0xf]  ;;  %v2929_v23 = vld [vmem:[%s4376_s1 + $0x56c] sm:$0xf0]  ;;  %v2422_v30 = vor.u32 %v2897_v20, %v2421_v19  ;;  %v1879_v58 = vld [vmem:[%s4376_s1 + $0x30] sm:$0xf0] }
  0x2c   :  { %1258 = vmatpush.bf16.msrb.mxu0 %v2454_v1  ;;  %2987 = vtanh.f32 %v1856_v9  ;;  %v2550_v33 = vor.u32 %v2929_v23, %v2549_v21  ;;  %v2405_v35 = vld [vmem:[%s4376_s1 + $0x440] sm:$0xf]  ;;  %v2893_v36 = vld [vmem:[%s4376_s1 + $0x44c] sm:$0xf0]  ;;  %v2007_v60 = vld [vmem:[%s4376_s1 + $0x130] sm:$0xf0]  ;;  %v1882_v2 = vor.u32 %v2759_v57, %v1879_v58 }
  0x2d   :  { %1271 = vmatpush.bf16.msrb.mxu1 %v2582_v5  ;;  %v2533_v37 = vld [vmem:[%s4376_s1 + $0x540] sm:$0xf]  ;;  %v2925_v41 = vld [vmem:[%s4376_s1 + $0x54c] sm:$0xf0]  ;;  %v2406_v48 = vor.u32 %v2893_v36, %v2405_v35  ;;  %v2755_v5 = vld [vmem:[%s4376_s1 + $0x4] sm:$0xf] }
  0x2e   :  { %1284 = vmatpush.bf16.msrb.mxu2 %v1946_v6  ;;  %v1857_v49 = vld [vmem:[%s4375_s0 + $0xb0] sm:$0xff]  ;;  %v2534_v50 = vor.u32 %v2925_v41, %v2533_v37  ;;  %v2389_v52 = vld [vmem:[%s4376_s1 + $0x420] sm:$0xf]  ;;  %v2010_v6 = vor.u32 %v2791_v59, %v2007_v60  ;;  %v2787_v8 = vld [vmem:[%s4376_s1 + $0x104] sm:$0xf] }
  0x2f   :  { %1297 = vmatpush.bf16.msrb.mxu3 %v2074_v10  ;;  %v2982_v26 = vpop.eup %2981  ;;  %v2889_v53 = vld [vmem:[%s4376_s1 + $0x42c] sm:$0xf0]  ;;  %v2517_v54 = vld [vmem:[%s4376_s1 + $0x520] sm:$0xf]  ;;  %2989 = vtanh.f32 %v1857_v49  ;;  %v1863_v7 = vld [vmem:[%s4376_s1 + $0x10] sm:$0xf0] }
  0x30   :  { %v2984_v29 = vpop.eup %2983  ;;  %1259 = vmatpush.bf16.msrb.mxu0 %v2438_v16  ;;  %v3382_v31 = vpack.c.bf16 %v2982_v26, %v2982_v26  ;;  %v2921_v56 = vld [vmem:[%s4376_s1 + $0x52c] sm:$0xf0]  ;;  %v2390_v62 = vor.u32 %v2889_v53, %v2389_v52  ;;  %v2373_v63 = vld [vmem:[%s4376_s1 + $0x400] sm:$0xf]  ;;  %2991 = vtanh.f32 %v1858_v61  ;;  %v1991_v9 = vld [vmem:[%s4376_s1 + $0x110] sm:$0xf0]  ;;  %v1866_v19 = vor.u32 %v2755_v5, %v1863_v7 }
  0x31   :  { %v2986_v32 = vpop.eup %2985  ;;  %1272 = vmatpush.bf16.msrb.mxu1 %v2566_v17  ;;  %v3393_v38 = vpack.c.bf16 %v2984_v29, %v2984_v29  ;;  %v2885_v0 = vld [vmem:[%s4376_s1 + $0x40c] sm:$0xf0]  ;;  %v2518_v1 = vor.u32 %v2921_v56, %v2517_v54  ;;  %v2501_v3 = vld [vmem:[%s4376_s1 + $0x500] sm:$0xf]  ;;  %v2847_v10 = vld [vmem:[%s4376_s1 + $0x2e4] sm:$0xf]  ;;  %v1994_v23 = vor.u32 %v2787_v8, %v1991_v9 }
  0x32   :  { %1285 = vmatpush.bf16.msrb.mxu2 %v1930_v18  ;;  %v2988_v39 = vpop.eup %2987  ;;  %1212 = vmatmul.bf16.vlgmr.msra.gmra.mxu0 %v3382_v31  ;;  %v3405_v44 = vpack.c.bf16 %v2986_v32, %v2986_v32  ;;  %v2917_v4 = vld [vmem:[%s4376_s1 + $0x50c] sm:$0xf0]  ;;  %v2231_v11 = vld [vmem:[%s4376_s1 + $0x2f0] sm:$0xf0]  ;;  %v2879_v12 = vld [vmem:[%s4376_s1 + $0x3e4] sm:$0xf]  ;;  %v2374_v13 = vor.u32 %v2885_v0, %v2373_v63 }
  0x33   :  { %1298 = vmatpush.bf16.msrb.mxu3 %v2058_v22  ;;  %1238 = vmatmul.bf16.vlgmr.msra.gmra.mxu2 %v3393_v38  ;;  %v3414_v47 = vpack.c.bf16 %v2988_v39, %v2988_v39  ;;  %v2359_v14 = vld [vmem:[%s4376_s1 + $0x3f0] sm:$0xf0]  ;;  %v2911_v15 = vld [vmem:[%s4376_s1 + $0x4e4] sm:$0xf]  ;;  %v2502_v18 = vor.u32 %v2917_v4, %v2501_v3  ;;  %v2234_v24 = vor.u32 %v2847_v10, %v2231_v11 }
  0x34   :  { %1260 = vmatpush.bf16.msrb.mxu0 %v2422_v30  ;;  %1225 = vmatmul.bf16.vlgmr.msra.gmra.mxu1 %v3405_v44  ;;  %v2487_v16 = vld [vmem:[%s4376_s1 + $0x4f0] sm:$0xf0]  ;;  %v2943_v20 = vld [vmem:[%s4376_s1 + $0x5e4] sm:$0xf]  ;;  %v2362_v25 = vor.u32 %v2879_v12, %v2359_v14 }
  0x35   :  { %1273 = vmatpush.bf16.msrb.mxu1 %v2550_v33  ;;  %1251 = vmatmul.bf16.vlgmr.msra.gmra.mxu3 %v3414_v47  ;;  %v2990_v17 = vpop.eup %2989  ;;  %v2615_v21 = vld [vmem:[%s4376_s1 + $0x5f0] sm:$0xf0]  ;;  %v2490_v26 = vor.u32 %v2911_v15, %v2487_v16  ;;  %v2843_v27 = vld [vmem:[%s4376_s1 + $0x2c4] sm:$0xf] }
  0x36   :  { %1286 = vmatpush.bf16.msrb.mxu2 %v1914_v34  ;;  %v2992_v22 = vpop.eup %2991  ;;  %v2215_v28 = vld [vmem:[%s4376_s1 + $0x2d0] sm:$0xf0]  ;;  %v2875_v29 = vld [vmem:[%s4376_s1 + $0x3c4] sm:$0xf]  ;;  %v2618_v30 = vor.u32 %v2943_v20, %v2615_v21  ;;  %v3514_v35 = vpack.c.bf16 %v2990_v17, %v2990_v17 }
  0x37   :  { %1299 = vmatpush.bf16.msrb.mxu3 %v2042_v40  ;;  %v2343_v32 = vld [vmem:[%s4376_s1 + $0x3d0] sm:$0xf0]  ;;  %v2907_v33 = vld [vmem:[%s4376_s1 + $0x4c4] sm:$0xf]  ;;  %v3522_v39 = vpack.c.bf16 %v2992_v22, %v2992_v22  ;;  %v2218_v40 = vor.u32 %v2843_v27, %v2215_v28 }
  0x38   :  { %1261 = vmatpush.bf16.msrb.mxu0 %v2406_v48  ;;  %v2471_v34 = vld [vmem:[%s4376_s1 + $0x4d0] sm:$0xf0]  ;;  %v2939_v36 = vld [vmem:[%s4376_s1 + $0x5c4] sm:$0xf]  ;;  %v2346_v41 = vor.u32 %v2875_v29, %v2343_v32 }
  0x39   :  { %1274 = vmatpush.bf16.msrb.mxu1 %v2534_v50  ;;  %v2599_v37 = vld [vmem:[%s4376_s1 + $0x5d0] sm:$0xf0]  ;;  %v2474_v42 = vor.u32 %v2907_v33, %v2471_v34  ;;  %v2839_v43 = vld [vmem:[%s4376_s1 + $0x2a4] sm:$0xf] }
  0x3a   :  { %1287 = vmatpush.bf16.msrb.mxu2 %v1898_v51  ;;  %v2199_v45 = vld [vmem:[%s4376_s1 + $0x2b0] sm:$0xf0]  ;;  %v2871_v46 = vld [vmem:[%s4376_s1 + $0x3a4] sm:$0xf]  ;;  %v2602_v48 = vor.u32 %v2939_v36, %v2599_v37 }
  0x3b   :  { %1300 = vmatpush.bf16.msrb.mxu3 %v2026_v55  ;;  %v2327_v49 = vld [vmem:[%s4376_s1 + $0x3b0] sm:$0xf0]  ;;  %v2903_v50 = vld [vmem:[%s4376_s1 + $0x4a4] sm:$0xf]  ;;  %v2202_v54 = vor.u32 %v2839_v43, %v2199_v45 }
  0x3c   :  { %1262 = vmatpush.bf16.msrb.mxu0 %v2390_v62  ;;  %v2455_v51 = vld [vmem:[%s4376_s1 + $0x4b0] sm:$0xf0]  ;;  %v2935_v52 = vld [vmem:[%s4376_s1 + $0x5a4] sm:$0xf]  ;;  %v2330_v55 = vor.u32 %v2871_v46, %v2327_v49 }
  0x3d   :  { %1275 = vmatpush.bf16.msrb.mxu1 %v2518_v1  ;;  %v2583_v53 = vld [vmem:[%s4376_s1 + $0x5b0] sm:$0xf0]  ;;  %v2458_v56 = vor.u32 %v2903_v50, %v2455_v51  ;;  %v2835_v57 = vld [vmem:[%s4376_s1 + $0x284] sm:$0xf] }
  0x3e   :  { %1288 = vmatpush.bf16.msrb.mxu2 %v1882_v2  ;;  %v2183_v58 = vld [vmem:[%s4376_s1 + $0x290] sm:$0xf0]  ;;  %v2867_v59 = vld [vmem:[%s4376_s1 + $0x384] sm:$0xf]  ;;  %v2586_v60 = vor.u32 %v2935_v52, %v2583_v53 }
  0x3f   :  { %1301 = vmatpush.bf16.msrb.mxu3 %v2010_v6  ;;  %v2311_v61 = vld [vmem:[%s4376_s1 + $0x390] sm:$0xf0]  ;;  %v2899_v62 = vld [vmem:[%s4376_s1 + $0x484] sm:$0xf]  ;;  %v2186_v2 = vor.u32 %v2835_v57, %v2183_v58 }
  0x40   :  { %1263 = vmatpush.bf16.msrb.mxu0 %v2374_v13  ;;  %v2439_v63 = vld [vmem:[%s4376_s1 + $0x490] sm:$0xf0]  ;;  %v2931_v0 = vld [vmem:[%s4376_s1 + $0x584] sm:$0xf]  ;;  %v2314_v3 = vor.u32 %v2867_v59, %v2311_v61 }
  0x41   :  { %1276 = vmatpush.bf16.msrb.mxu1 %v2502_v18  ;;  %v2567_v1 = vld [vmem:[%s4376_s1 + $0x590] sm:$0xf0]  ;;  %v2442_v4 = vor.u32 %v2899_v62, %v2439_v63  ;;  %v2831_v5 = vld [vmem:[%s4376_s1 + $0x264] sm:$0xf] }
  0x42   :  { %1289 = vmatpush.bf16.msrb.mxu2 %v1866_v19  ;;  %v2167_v6 = vld [vmem:[%s4376_s1 + $0x270] sm:$0xf0]  ;;  %v2863_v7 = vld [vmem:[%s4376_s1 + $0x364] sm:$0xf]  ;;  %v2570_v8 = vor.u32 %v2931_v0, %v2567_v1 }
  0x43   :  { %1302 = vmatpush.bf16.msrb.mxu3 %v1994_v23  ;;  %1264 = vmatmul.bf16.vlgmr.msrb.gmra.mxu0 %v3514_v35  ;;  %v2295_v9 = vld [vmem:[%s4376_s1 + $0x370] sm:$0xf0]  ;;  %v2895_v10 = vld [vmem:[%s4376_s1 + $0x464] sm:$0xf]  ;;  %v2170_v14 = vor.u32 %v2831_v5, %v2167_v6 }
  0x44   :  { %1308 = vmatpush.bf16.msra.mxu0 %v2234_v24  ;;  %1277 = vmatmul.bf16.vlgmr.msrb.gmra.mxu1 %v3522_v39  ;;  %v2423_v11 = vld [vmem:[%s4376_s1 + $0x470] sm:$0xf0]  ;;  %v2927_v12 = vld [vmem:[%s4376_s1 + $0x564] sm:$0xf]  ;;  %v2298_v15 = vor.u32 %v2863_v7, %v2295_v9 }
  0x45   :  { %1321 = vmatpush.bf16.msra.mxu1 %v2362_v25  ;;  %1290 = vmatmul.bf16.vlgmr.msrb.gmra.mxu2 %v3382_v31  ;;  %v2551_v13 = vld [vmem:[%s4376_s1 + $0x570] sm:$0xf0]  ;;  %v2426_v16 = vor.u32 %v2895_v10, %v2423_v11  ;;  %v2827_v17 = vld [vmem:[%s4376_s1 + $0x244] sm:$0xf] }
  0x46   :  { %1334 = vmatpush.bf16.msra.mxu2 %v2490_v26  ;;  %1303 = vmatmul.bf16.vlgmr.msrb.gmra.mxu3 %v3405_v44  ;;  %v2151_v18 = vld [vmem:[%s4376_s1 + $0x250] sm:$0xf0]  ;;  %v2859_v19 = vld [vmem:[%s4376_s1 + $0x344] sm:$0xf]  ;;  %v2554_v20 = vor.u32 %v2927_v12, %v2551_v13 }
  0x47   :  { %1347 = vmatpush.bf16.msra.mxu3 %v2618_v30  ;;  %v2279_v21 = vld [vmem:[%s4376_s1 + $0x350] sm:$0xf0]  ;;  %v2891_v22 = vld [vmem:[%s4376_s1 + $0x444] sm:$0xf]  ;;  %v2154_v26 = vor.u32 %v2827_v17, %v2151_v18 }
  0x48   :  { %1309 = vmatpush.bf16.msra.mxu0 %v2218_v40  ;;  %v2407_v23 = vld [vmem:[%s4376_s1 + $0x450] sm:$0xf0]  ;;  %v2923_v24 = vld [vmem:[%s4376_s1 + $0x544] sm:$0xf]  ;;  %v2282_v28 = vor.u32 %v2859_v19, %v2279_v21 }
  0x49   :  { %1322 = vmatpush.bf16.msra.mxu1 %v2346_v41  ;;  %v2535_v25 = vld [vmem:[%s4376_s1 + $0x550] sm:$0xf0]  ;;  %v2823_v27 = vld [vmem:[%s4376_s1 + $0x224] sm:$0xf]  ;;  %v2410_v29 = vor.u32 %v2891_v22, %v2407_v23 }
  0x4a   :  { %1335 = vmatpush.bf16.msra.mxu2 %v2474_v42  ;;  %v2135_v30 = vld [vmem:[%s4376_s1 + $0x230] sm:$0xf0]  ;;  %v2855_v32 = vld [vmem:[%s4376_s1 + $0x324] sm:$0xf]  ;;  %v2538_v34 = vor.u32 %v2923_v24, %v2535_v25 }
  0x4b   :  { %1348 = vmatpush.bf16.msra.mxu3 %v2602_v48  ;;  %v2263_v33 = vld [vmem:[%s4376_s1 + $0x330] sm:$0xf0]  ;;  %v2887_v36 = vld [vmem:[%s4376_s1 + $0x424] sm:$0xf] }
  0x4c   :  { %1310 = vmatpush.bf16.msra.mxu0 %v2202_v54  ;;  %v2391_v37 = vld [vmem:[%s4376_s1 + $0x430] sm:$0xf0]  ;;  %v2919_v40 = vld [vmem:[%s4376_s1 + $0x524] sm:$0xf] }
  0x4d   :  { %1323 = vmatpush.bf16.msra.mxu1 %v2330_v55  ;;  %v2519_v41 = vld [vmem:[%s4376_s1 + $0x530] sm:$0xf0] }
  0x4e   :  { %1336 = vmatpush.bf16.msra.mxu2 %v2458_v56 }
  0x4f   :  { %1349 = vmatpush.bf16.msra.mxu3 %v2586_v60 }
  0x50   :  { %1311 = vmatpush.bf16.msra.mxu0 %v2186_v2 }
  0x51   :  { %1324 = vmatpush.bf16.msra.mxu1 %v2314_v3 }
  0x52   :  { %1337 = vmatpush.bf16.msra.mxu2 %v2442_v4 }
  0x53   :  { %1350 = vmatpush.bf16.msra.mxu3 %v2570_v8 }
  0x54   :  { %1312 = vmatpush.bf16.msra.mxu0 %v2170_v14 }
  0x55   :  { %1325 = vmatpush.bf16.msra.mxu1 %v2298_v15 }
  0x56   :  { %1338 = vmatpush.bf16.msra.mxu2 %v2426_v16 }
  0x57   :  { %1351 = vmatpush.bf16.msra.mxu3 %v2554_v20 }
  0x58   :  { %10 = vsyncpa [#allocation3], 0  ;;  %1313 = vmatpush.bf16.msra.mxu0 %v2154_v26  ;;  %v2138_v42 = vor.u32 %v2823_v27, %v2135_v30  ;;  %v2819_v43 = vld [vmem:[%s4376_s1 + $0x204] sm:$0xf]  ;;  %v2119_v45 = vld [vmem:[%s4376_s1 + $0x210] sm:$0xf0]  ;;  %v2266_v46 = vor.u32 %v2855_v32, %v2263_v33  ;;  %v2394_v48 = vor.u32 %v2887_v36, %v2391_v37  ;;  %v2522_v52 = vor.u32 %v2919_v40, %v2519_v41 }
  0x59   :  { %1326 = vmatpush.bf16.msra.mxu1 %v2282_v28  ;;  %v2851_v49 = vld [vmem:[%s4376_s1 + $0x304] sm:$0xf]  ;;  %v2247_v50 = vld [vmem:[%s4376_s1 + $0x310] sm:$0xf0]  ;;  %v1981_v56 = vld [vmem:[%s4376_s1 + $0xe8] sm:$0xf]  ;;  %v2122_v59 = vor.u32 %v2819_v43, %v2119_v45 }
  0x5a   :  { %1339 = vmatpush.bf16.msra.mxu2 %v2410_v29  ;;  %v2883_v51 = vld [vmem:[%s4376_s1 + $0x404] sm:$0xf]  ;;  %v2375_v53 = vld [vmem:[%s4376_s1 + $0x410] sm:$0xf0]  ;;  %v2786_v57 = vld [vmem:[%s4376_s1 + $0xf4] sm:$0xf0]  ;;  %v2250_v63 = vor.u32 %v2851_v49, %v2247_v50 }
  0x5b   :  { %1352 = vmatpush.bf16.msra.mxu3 %v2538_v34  ;;  %v2915_v54 = vld [vmem:[%s4376_s1 + $0x504] sm:$0xf]  ;;  %v2503_v55 = vld [vmem:[%s4376_s1 + $0x510] sm:$0xf0]  ;;  %v2109_v58 = vld [vmem:[%s4376_s1 + $0x1e8] sm:$0xf]  ;;  %v2378_v0 = vor.u32 %v2883_v51, %v2375_v53  ;;  %v1982_v4 = vor.u32 %v2786_v57, %v1981_v56 }
  0x5c   :  { %1314 = vmatpush.bf16.msra.mxu0 %v2138_v42  ;;  %v2818_v60 = vld [vmem:[%s4376_s1 + $0x1f4] sm:$0xf0]  ;;  %v2237_v61 = vld [vmem:[%s4376_s1 + $0x2e8] sm:$0xf]  ;;  %v2506_v3 = vor.u32 %v2915_v54, %v2503_v55  ;;  %s3027_s11 = smov [#allocation2]   ;;  %s1844_s14 = sshll.u32 %s4380_s5, 4  ;;  %s1845_s14 = int_to_ptr.hbm [resolvable:$true] %s1844_s14 }
  0x5d   :  { %v2850_v62 = vld [vmem:[%s4376_s1 + $0x2f4] sm:$0xf0]  ;;  %1327 = vmatpush.bf16.msra.mxu1 %v2266_v46  ;;  %v2365_v1 = vld [vmem:[%s4376_s1 + $0x3e8] sm:$0xf]  ;;  %v2110_v5 = vor.u32 %v2818_v60, %v2109_v58 }
  0x5e   :  { %1340 = vmatpush.bf16.msra.mxu2 %v2394_v48  ;;  %v2882_v2 = vld [vmem:[%s4376_s1 + $0x3f4] sm:$0xf0]  ;;  %v2238_v6 = vor.u32 %v2850_v62, %v2237_v61  ;;  %v1965_v7 = vld [vmem:[%s4376_s1 + $0xc8] sm:$0xf] }
  0x5f   :  { %1353 = vmatpush.bf16.msra.mxu3 %v2522_v52  ;;  %v2782_v8 = vld [vmem:[%s4376_s1 + $0xd4] sm:$0xf0]  ;;  %v2093_v9 = vld [vmem:[%s4376_s1 + $0x1c8] sm:$0xf]  ;;  %v2366_v10 = vor.u32 %v2882_v2, %v2365_v1 }
  0x60   :  { %1315 = vmatpush.bf16.msra.mxu0 %v2122_v59  ;;  %v2814_v11 = vld [vmem:[%s4376_s1 + $0x1d4] sm:$0xf0]  ;;  %v2221_v12 = vld [vmem:[%s4376_s1 + $0x2c8] sm:$0xf]  ;;  %v1966_v16 = vor.u32 %v2782_v8, %v1965_v7 }
  0x61   :  { %v2846_v13 = vld [vmem:[%s4376_s1 + $0x2d4] sm:$0xf0]  ;;  %1328 = vmatpush.bf16.msra.mxu1 %v2250_v63  ;;  %v2349_v14 = vld [vmem:[%s4376_s1 + $0x3c8] sm:$0xf]  ;;  %v2094_v17 = vor.u32 %v2814_v11, %v2093_v9 }
  0x62   :  { %1341 = vmatpush.bf16.msra.mxu2 %v2378_v0  ;;  %v2878_v15 = vld [vmem:[%s4376_s1 + $0x3d4] sm:$0xf0]  ;;  %v2222_v18 = vor.u32 %v2846_v13, %v2221_v12  ;;  %v1949_v19 = vld [vmem:[%s4376_s1 + $0xa8] sm:$0xf] }
  0x63   :  { %1354 = vmatpush.bf16.msra.mxu3 %v2506_v3  ;;  %v2778_v20 = vld [vmem:[%s4376_s1 + $0xb4] sm:$0xf0]  ;;  %v2077_v21 = vld [vmem:[%s4376_s1 + $0x1a8] sm:$0xf]  ;;  %v2350_v22 = vor.u32 %v2878_v15, %v2349_v14  ;;  %1316 = vmatmul.bf16.vlgmr.msra.gmra.mxu0 %v3393_v38 }
  0x64   :  { %1360 = vmatpush.bf16.msrb.mxu0 %v1982_v4  ;;  %v2810_v23 = vld [vmem:[%s4376_s1 + $0x1b4] sm:$0xf0]  ;;  %v2205_v24 = vld [vmem:[%s4376_s1 + $0x2a8] sm:$0xf]  ;;  %1329 = vmatmul.bf16.vlgmr.msra.gmra.mxu1 %v3414_v47  ;;  %v1950_v28 = vor.u32 %v2778_v20, %v1949_v19 }
  0x65   :  { %1373 = vmatpush.bf16.msrb.mxu1 %v2110_v5  ;;  %1342 = vmatmul.bf16.vlgmr.msra.gmra.mxu2 %v3514_v35  ;;  %v2842_v25 = vld [vmem:[%s4376_s1 + $0x2b4] sm:$0xf0]  ;;  %v2333_v26 = vld [vmem:[%s4376_s1 + $0x3a8] sm:$0xf]  ;;  %v2078_v29 = vor.u32 %v2810_v23, %v2077_v21 }
  0x66   :  { %1386 = vmatpush.bf16.msrb.mxu2 %v2238_v6  ;;  %1355 = vmatmul.bf16.vlgmr.msra.gmra.mxu3 %v3522_v39  ;;  %v2874_v27 = vld [vmem:[%s4376_s1 + $0x3b4] sm:$0xf0]  ;;  %v2206_v30 = vor.u32 %v2842_v25, %v2205_v24  ;;  %v1933_v32 = vld [vmem:[%s4376_s1 + $0x88] sm:$0xf] }
  0x67   :  { %1399 = vmatpush.bf16.msrb.mxu3 %v2366_v10  ;;  %v2774_v33 = vld [vmem:[%s4376_s1 + $0x94] sm:$0xf0]  ;;  %v2061_v34 = vld [vmem:[%s4376_s1 + $0x188] sm:$0xf]  ;;  %v2334_v36 = vor.u32 %v2874_v27, %v2333_v26 }
  0x68   :  { %1361 = vmatpush.bf16.msrb.mxu0 %v1966_v16  ;;  %v2806_v37 = vld [vmem:[%s4376_s1 + $0x194] sm:$0xf0]  ;;  %v2189_v40 = vld [vmem:[%s4376_s1 + $0x288] sm:$0xf]  ;;  %v1934_v45 = vor.u32 %v2774_v33, %v1933_v32 }
  0x69   :  { %1374 = vmatpush.bf16.msrb.mxu1 %v2094_v17  ;;  %v2838_v41 = vld [vmem:[%s4376_s1 + $0x294] sm:$0xf0]  ;;  %v2317_v42 = vld [vmem:[%s4376_s1 + $0x388] sm:$0xf]  ;;  %v2062_v46 = vor.u32 %v2806_v37, %v2061_v34  ;;  %v2784_v37 = vld [vmem:[%s4376_s1 + $0xec] sm:$0xf] }
  0x6a   :  { %1387 = vmatpush.bf16.msrb.mxu2 %v2222_v18  ;;  %v2870_v43 = vld [vmem:[%s4376_s1 + $0x394] sm:$0xf0]  ;;  %v2190_v48 = vor.u32 %v2838_v41, %v2189_v40  ;;  %v1917_v49 = vld [vmem:[%s4376_s1 + $0x68] sm:$0xf]  ;;  %v1983_v40 = vld [vmem:[%s4376_s1 + $0xf8] sm:$0xf0] }
  0x6b   :  { %1400 = vmatpush.bf16.msrb.mxu3 %v2350_v22  ;;  %v2770_v50 = vld [vmem:[%s4376_s1 + $0x74] sm:$0xf0]  ;;  %v2045_v51 = vld [vmem:[%s4376_s1 + $0x168] sm:$0xf]  ;;  %v2318_v52 = vor.u32 %v2870_v43, %v2317_v42  ;;  %v2816_v43 = vld [vmem:[%s4376_s1 + $0x1ec] sm:$0xf] }
  0x6c   :  { %1362 = vmatpush.bf16.msrb.mxu0 %v1950_v28  ;;  %v2802_v53 = vld [vmem:[%s4376_s1 + $0x174] sm:$0xf0]  ;;  %v2173_v54 = vld [vmem:[%s4376_s1 + $0x268] sm:$0xf]  ;;  %v1918_v58 = vor.u32 %v2770_v50, %v1917_v49  ;;  %v1986_v50 = vor.u32 %v2784_v37, %v1983_v40 }
  0x6d   :  { %1375 = vmatpush.bf16.msrb.mxu1 %v2078_v29  ;;  %v2834_v55 = vld [vmem:[%s4376_s1 + $0x274] sm:$0xf0]  ;;  %v2301_v56 = vld [vmem:[%s4376_s1 + $0x368] sm:$0xf]  ;;  %v2046_v59 = vor.u32 %v2802_v53, %v2045_v51 }
  0x6e   :  { %1388 = vmatpush.bf16.msrb.mxu2 %v2206_v30  ;;  %v2866_v57 = vld [vmem:[%s4376_s1 + $0x374] sm:$0xf0]  ;;  %v2174_v60 = vor.u32 %v2834_v55, %v2173_v54  ;;  %v1901_v61 = vld [vmem:[%s4376_s1 + $0x48] sm:$0xf] }
  0x6f   :  { %1401 = vmatpush.bf16.msrb.mxu3 %v2334_v36  ;;  %v2766_v62 = vld [vmem:[%s4376_s1 + $0x54] sm:$0xf0]  ;;  %v2029_v63 = vld [vmem:[%s4376_s1 + $0x148] sm:$0xf]  ;;  %v2302_v0 = vor.u32 %v2866_v57, %v2301_v56  ;;  %v2780_v56 = vld [vmem:[%s4376_s1 + $0xcc] sm:$0xf] }
  0x70   :  { %1363 = vmatpush.bf16.msrb.mxu0 %v1934_v45  ;;  %v2798_v1 = vld [vmem:[%s4376_s1 + $0x154] sm:$0xf0]  ;;  %v2157_v2 = vld [vmem:[%s4376_s1 + $0x248] sm:$0xf]  ;;  %v1902_v6 = vor.u32 %v2766_v62, %v1901_v61  ;;  %v2111_v45 = vld [vmem:[%s4376_s1 + $0x1f8] sm:$0xf0] }
  0x71   :  { %1376 = vmatpush.bf16.msrb.mxu1 %v2062_v46  ;;  %v2830_v3 = vld [vmem:[%s4376_s1 + $0x254] sm:$0xf0]  ;;  %v2285_v4 = vld [vmem:[%s4376_s1 + $0x348] sm:$0xf]  ;;  %v2030_v7 = vor.u32 %v2798_v1, %v2029_v63  ;;  %v2114_v54 = vor.u32 %v2816_v43, %v2111_v45  ;;  %v1967_v57 = vld [vmem:[%s4376_s1 + $0xd8] sm:$0xf0] }
  0x72   :  { %1389 = vmatpush.bf16.msrb.mxu2 %v2190_v48  ;;  %v2862_v5 = vld [vmem:[%s4376_s1 + $0x354] sm:$0xf0]  ;;  %v2158_v8 = vor.u32 %v2830_v3, %v2157_v2  ;;  %v1885_v9 = vld [vmem:[%s4376_s1 + $0x28] sm:$0xf]  ;;  %v1970_v62 = vor.u32 %v2780_v56, %v1967_v57  ;;  %v2764_v45 = vld [vmem:[%s4376_s1 + $0x4c] sm:$0xf] }
  0x73   :  { %1402 = vmatpush.bf16.msrb.mxu3 %v2318_v52  ;;  %v2762_v10 = vld [vmem:[%s4376_s1 + $0x34] sm:$0xf0]  ;;  %v2013_v11 = vld [vmem:[%s4376_s1 + $0x128] sm:$0xf]  ;;  %v2286_v12 = vor.u32 %v2862_v5, %v2285_v4  ;;  %v2776_v4 = vld [vmem:[%s4376_s1 + $0xac] sm:$0xf] }
  0x74   :  { %1364 = vmatpush.bf16.msrb.mxu0 %v1918_v58  ;;  %v2794_v13 = vld [vmem:[%s4376_s1 + $0x134] sm:$0xf0]  ;;  %v2141_v14 = vld [vmem:[%s4376_s1 + $0x228] sm:$0xf]  ;;  %v1886_v18 = vor.u32 %v2762_v10, %v1885_v9  ;;  %v2812_v58 = vld [vmem:[%s4376_s1 + $0x1cc] sm:$0xf] }
  0x75   :  { %1377 = vmatpush.bf16.msrb.mxu1 %v2046_v59  ;;  %v2826_v15 = vld [vmem:[%s4376_s1 + $0x234] sm:$0xf0]  ;;  %v2269_v16 = vld [vmem:[%s4376_s1 + $0x328] sm:$0xf]  ;;  %v2014_v21 = vor.u32 %v2794_v13, %v2013_v11  ;;  %v2095_v59 = vld [vmem:[%s4376_s1 + $0x1d8] sm:$0xf0] }
  0x76   :  { %1390 = vmatpush.bf16.msrb.mxu2 %v2174_v60  ;;  %v2858_v17 = vld [vmem:[%s4376_s1 + $0x334] sm:$0xf0]  ;;  %v1869_v19 = vld [vmem:[%s4376_s1 + $0x8] sm:$0xf]  ;;  %v2142_v22 = vor.u32 %v2826_v15, %v2141_v14  ;;  %v2098_v2 = vor.u32 %v2812_v58, %v2095_v59  ;;  %v1951_v5 = vld [vmem:[%s4376_s1 + $0xb8] sm:$0xf0] }
  0x77   :  { %1403 = vmatpush.bf16.msrb.mxu3 %v2302_v0  ;;  %v2758_v20 = vld [vmem:[%s4376_s1 + $0x14] sm:$0xf0]  ;;  %v1997_v23 = vld [vmem:[%s4376_s1 + $0x108] sm:$0xf]  ;;  %v2270_v26 = vor.u32 %v2858_v17, %v2269_v16  ;;  %v1954_v10 = vor.u32 %v2776_v4, %v1951_v5  ;;  %v2772_v16 = vld [vmem:[%s4376_s1 + $0x8c] sm:$0xf] }
  0x78   :  { %1365 = vmatpush.bf16.msrb.mxu0 %v1902_v6  ;;  %v2790_v24 = vld [vmem:[%s4376_s1 + $0x114] sm:$0xf0]  ;;  %v2125_v25 = vld [vmem:[%s4376_s1 + $0x208] sm:$0xf]  ;;  %v1870_v34 = vor.u32 %v2758_v20, %v1869_v19  ;;  %v2808_v6 = vld [vmem:[%s4376_s1 + $0x1ac] sm:$0xf] }
  0x79   :  { %1378 = vmatpush.bf16.msrb.mxu1 %v2030_v7  ;;  %v2822_v27 = vld [vmem:[%s4376_s1 + $0x214] sm:$0xf0]  ;;  %v2253_v28 = vld [vmem:[%s4376_s1 + $0x308] sm:$0xf]  ;;  %v1998_v41 = vor.u32 %v2790_v24, %v1997_v23  ;;  %v2079_v7 = vld [vmem:[%s4376_s1 + $0x1b8] sm:$0xf0] }
  0x7a   :  { %1391 = vmatpush.bf16.msrb.mxu2 %v2158_v8  ;;  %v2854_v29 = vld [vmem:[%s4376_s1 + $0x314] sm:$0xf0]  ;;  %v2493_v30 = vld [vmem:[%s4376_s1 + $0x4e8] sm:$0xf]  ;;  %v2126_v42 = vor.u32 %v2822_v27, %v2125_v25  ;;  %v2082_v14 = vor.u32 %v2808_v6, %v2079_v7  ;;  %v1935_v17 = vld [vmem:[%s4376_s1 + $0x98] sm:$0xf0] }
  0x7b   :  { %1404 = vmatpush.bf16.msrb.mxu3 %v2286_v12  ;;  %v2914_v32 = vld [vmem:[%s4376_s1 + $0x4f4] sm:$0xf0]  ;;  %v2621_v33 = vld [vmem:[%s4376_s1 + $0x5e8] sm:$0xf]  ;;  %v2254_v46 = vor.u32 %v2854_v29, %v2253_v28  ;;  %v2063_v19 = vld [vmem:[%s4376_s1 + $0x198] sm:$0xf0] }
  0x7c   :  { %1366 = vmatpush.bf16.msrb.mxu0 %v1886_v18  ;;  %v2946_v36 = vld [vmem:[%s4376_s1 + $0x5f4] sm:$0xf0]  ;;  %v2494_v48 = vor.u32 %v2914_v32, %v2493_v30  ;;  %v2477_v51 = vld [vmem:[%s4376_s1 + $0x4c8] sm:$0xf]  ;;  %v2804_v18 = vld [vmem:[%s4376_s1 + $0x18c] sm:$0xf] }
  0x7d   :  { %1379 = vmatpush.bf16.msrb.mxu1 %v2014_v21  ;;  %v2622_v49 = vor.u32 %v2946_v36, %v2621_v33  ;;  %v2910_v52 = vld [vmem:[%s4376_s1 + $0x4d4] sm:$0xf0]  ;;  %v2605_v53 = vld [vmem:[%s4376_s1 + $0x5c8] sm:$0xf]  ;;  %v2768_v28 = vld [vmem:[%s4376_s1 + $0x6c] sm:$0xf] }
  0x7e   :  { %1392 = vmatpush.bf16.msrb.mxu2 %v2142_v22  ;;  %v2942_v55 = vld [vmem:[%s4376_s1 + $0x5d4] sm:$0xf0]  ;;  %v2478_v60 = vor.u32 %v2910_v52, %v2477_v51  ;;  %v2461_v63 = vld [vmem:[%s4376_s1 + $0x4a8] sm:$0xf]  ;;  %v1938_v22 = vor.u32 %v2772_v16, %v1935_v17  ;;  %v1919_v29 = vld [vmem:[%s4376_s1 + $0x78] sm:$0xf0] }
  0x7f   :  { %1405 = vmatpush.bf16.msrb.mxu3 %v2270_v26  ;;  %v2606_v61 = vor.u32 %v2942_v55, %v2605_v53  ;;  %v2906_v0 = vld [vmem:[%s4376_s1 + $0x4b4] sm:$0xf0]  ;;  %v2589_v1 = vld [vmem:[%s4376_s1 + $0x5a8] sm:$0xf]  ;;  %v2066_v26 = vor.u32 %v2804_v18, %v2063_v19  ;;  %v2800_v30 = vld [vmem:[%s4376_s1 + $0x16c] sm:$0xf]  ;;  %v1922_v36 = vor.u32 %v2768_v28, %v1919_v29 }
  0x80   :  { %1367 = vmatpush.bf16.msrb.mxu0 %v1870_v34  ;;  %v2938_v3 = vld [vmem:[%s4376_s1 + $0x5b4] sm:$0xf0]  ;;  %v2462_v8 = vor.u32 %v2906_v0, %v2461_v63  ;;  %v2445_v11 = vld [vmem:[%s4376_s1 + $0x488] sm:$0xf]  ;;  %v2047_v32 = vld [vmem:[%s4376_s1 + $0x178] sm:$0xf0] }
  0x81   :  { %1380 = vmatpush.bf16.msrb.mxu1 %v1998_v41  ;;  %v2590_v9 = vor.u32 %v2938_v3, %v2589_v1  ;;  %v2902_v12 = vld [vmem:[%s4376_s1 + $0x494] sm:$0xf0]  ;;  %v2573_v13 = vld [vmem:[%s4376_s1 + $0x588] sm:$0xf]  ;;  %v2760_v58 = vld [vmem:[%s4376_s1 + $0x2c] sm:$0xf] }
  0x82   :  { %1393 = vmatpush.bf16.msrb.mxu2 %v2126_v42  ;;  %v2934_v15 = vld [vmem:[%s4376_s1 + $0x594] sm:$0xf0]  ;;  %v2446_v20 = vor.u32 %v2902_v12, %v2445_v11  ;;  %v2429_v23 = vld [vmem:[%s4376_s1 + $0x468] sm:$0xf]  ;;  %v2050_v42 = vor.u32 %v2800_v30, %v2047_v32  ;;  %v1887_v59 = vld [vmem:[%s4376_s1 + $0x38] sm:$0xf0] }
  0x83   :  { %1406 = vmatpush.bf16.msrb.mxu3 %v2254_v46  ;;  %1368 = vmatmul.bf16.vlgmr.msrb.gmra.mxu0 %v3382_v31  ;;  %v2574_v21 = vor.u32 %v2934_v15, %v2573_v13  ;;  %v2898_v24 = vld [vmem:[%s4376_s1 + $0x474] sm:$0xf0]  ;;  %v2557_v25 = vld [vmem:[%s4376_s1 + $0x568] sm:$0xf]  ;;  %v1903_v46 = vld [vmem:[%s4376_s1 + $0x58] sm:$0xf0] }
  0x84   :  { %1412 = vmatpush.bf16.msra.mxu0 %v2494_v48  ;;  %1381 = vmatmul.bf16.vlgmr.msrb.gmra.mxu1 %v3405_v44  ;;  %v2930_v27 = vld [vmem:[%s4376_s1 + $0x574] sm:$0xf0]  ;;  %v2430_v33 = vor.u32 %v2898_v24, %v2429_v23  ;;  %v2413_v37 = vld [vmem:[%s4376_s1 + $0x448] sm:$0xf]  ;;  %v2796_v48 = vld [vmem:[%s4376_s1 + $0x14c] sm:$0xf]  ;;  %v1906_v52 = vor.u32 %v2764_v45, %v1903_v46 }
  0x85   :  { %1425 = vmatpush.bf16.msra.mxu1 %v2622_v49  ;;  %1394 = vmatmul.bf16.vlgmr.msrb.gmra.mxu2 %v3393_v38  ;;  %v2558_v34 = vor.u32 %v2930_v27, %v2557_v25  ;;  %v2894_v40 = vld [vmem:[%s4376_s1 + $0x454] sm:$0xf0]  ;;  %v2541_v41 = vld [vmem:[%s4376_s1 + $0x548] sm:$0xf]  ;;  %v2031_v49 = vld [vmem:[%s4376_s1 + $0x158] sm:$0xf0] }
  0x86   :  { %1438 = vmatpush.bf16.msra.mxu2 %v1986_v50  ;;  %1407 = vmatmul.bf16.vlgmr.msrb.gmra.mxu3 %v3414_v47  ;;  %v2926_v43 = vld [vmem:[%s4376_s1 + $0x554] sm:$0xf0]  ;;  %v2414_v50 = vor.u32 %v2894_v40, %v2413_v37  ;;  %v2397_v53 = vld [vmem:[%s4376_s1 + $0x428] sm:$0xf]  ;;  %v2034_v56 = vor.u32 %v2796_v48, %v2031_v49  ;;  %v2756_v5 = vld [vmem:[%s4376_s1 + $0xc] sm:$0xf] }
  0x87   :  { %1451 = vmatpush.bf16.msra.mxu3 %v2114_v54  ;;  %v2542_v51 = vor.u32 %v2926_v43, %v2541_v41  ;;  %v2890_v54 = vld [vmem:[%s4376_s1 + $0x434] sm:$0xf0]  ;;  %v2525_v55 = vld [vmem:[%s4376_s1 + $0x528] sm:$0xf]  ;;  %v1871_v7 = vld [vmem:[%s4376_s1 + $0x18] sm:$0xf0] }
  0x88   :  { %1413 = vmatpush.bf16.msra.mxu0 %v2478_v60  ;;  %v2922_v57 = vld [vmem:[%s4376_s1 + $0x534] sm:$0xf0]  ;;  %v2792_v60 = vld [vmem:[%s4376_s1 + $0x12c] sm:$0xf]  ;;  %v2381_v63 = vld [vmem:[%s4376_s1 + $0x408] sm:$0xf]  ;;  %v1874_v18 = vor.u32 %v2756_v5, %v1871_v7 }
  0x89   :  { %1426 = vmatpush.bf16.msra.mxu1 %v2606_v61  ;;  %v2015_v61 = vld [vmem:[%s4376_s1 + $0x138] sm:$0xf0]  ;;  %v2886_v0 = vld [vmem:[%s4376_s1 + $0x414] sm:$0xf0]  ;;  %v2526_v1 = vor.u32 %v2922_v57, %v2525_v55  ;;  %v2509_v3 = vld [vmem:[%s4376_s1 + $0x508] sm:$0xf] }
  0x8a   :  { %1439 = vmatpush.bf16.msra.mxu2 %v1970_v62  ;;  %v2398_v62 = vor.u32 %v2890_v54, %v2397_v53  ;;  %v2918_v4 = vld [vmem:[%s4376_s1 + $0x514] sm:$0xf0]  ;;  %v2018_v6 = vor.u32 %v2792_v60, %v2015_v61  ;;  %v2239_v11 = vld [vmem:[%s4376_s1 + $0x2f8] sm:$0xf0]  ;;  %v2880_v12 = vld [vmem:[%s4376_s1 + $0x3ec] sm:$0xf]  ;;  %v2382_v13 = vor.u32 %v2886_v0, %v2381_v63 }
  0x8b   :  { %1452 = vmatpush.bf16.msra.mxu3 %v2098_v2  ;;  %v1890_v2 = vor.u32 %v2760_v58, %v1887_v59  ;;  %v2912_v15 = vld [vmem:[%s4376_s1 + $0x4ec] sm:$0xf]  ;;  %v2495_v16 = vld [vmem:[%s4376_s1 + $0x4f8] sm:$0xf0]  ;;  %v2510_v17 = vor.u32 %v2918_v4, %v2509_v3 }
  0x8c   :  { %1414 = vmatpush.bf16.msra.mxu0 %v2462_v8  ;;  %v2788_v8 = vld [vmem:[%s4376_s1 + $0x10c] sm:$0xf]  ;;  %v2498_v24 = vor.u32 %v2912_v15, %v2495_v16  ;;  %v2351_v29 = vld [vmem:[%s4376_s1 + $0x3d8] sm:$0xf0] }
  0x8d   :  { %1427 = vmatpush.bf16.msra.mxu1 %v2590_v9  ;;  %v1999_v9 = vld [vmem:[%s4376_s1 + $0x118] sm:$0xf0]  ;;  %v2944_v19 = vld [vmem:[%s4376_s1 + $0x5ec] sm:$0xf] }
  0x8e   :  { %1440 = vmatpush.bf16.msra.mxu2 %v1954_v10  ;;  %v2848_v10 = vld [vmem:[%s4376_s1 + $0x2ec] sm:$0xf]  ;;  %v2479_v32 = vld [vmem:[%s4376_s1 + $0x4d8] sm:$0xf0] }
  0x8f   :  { %1453 = vmatpush.bf16.msra.mxu3 %v2082_v14  ;;  %v2367_v14 = vld [vmem:[%s4376_s1 + $0x3f8] sm:$0xf0]  ;;  %v2844_v25 = vld [vmem:[%s4376_s1 + $0x2cc] sm:$0xf] }
  0x90   :  { %1415 = vmatpush.bf16.msra.mxu0 %v2446_v20  ;;  %v2623_v20 = vld [vmem:[%s4376_s1 + $0x5f8] sm:$0xf0]  ;;  %v2370_v23 = vor.u32 %v2880_v12, %v2367_v14  ;;  %v2876_v27 = vld [vmem:[%s4376_s1 + $0x3cc] sm:$0xf] }
  0x91   :  { %1428 = vmatpush.bf16.msra.mxu1 %v2574_v21  ;;  %v2002_v21 = vor.u32 %v2788_v8, %v1999_v9  ;;  %v2626_v28 = vor.u32 %v2944_v19, %v2623_v20  ;;  %v2908_v30 = vld [vmem:[%s4376_s1 + $0x4cc] sm:$0xf]  ;;  %v2354_v37 = vor.u32 %v2876_v27, %v2351_v29  ;;  %v2335_v46 = vld [vmem:[%s4376_s1 + $0x3b8] sm:$0xf0] }
  0x92   :  { %1441 = vmatpush.bf16.msra.mxu2 %v1938_v22  ;;  %v2242_v22 = vor.u32 %v2848_v10, %v2239_v11  ;;  %v2482_v40 = vor.u32 %v2908_v30, %v2479_v32  ;;  %v2840_v41 = vld [vmem:[%s4376_s1 + $0x2ac] sm:$0xf]  ;;  %v2463_v49 = vld [vmem:[%s4376_s1 + $0x4b8] sm:$0xf0] }
  0x93   :  { %1454 = vmatpush.bf16.msra.mxu3 %v2066_v26  ;;  %v2223_v26 = vld [vmem:[%s4376_s1 + $0x2d8] sm:$0xf0]  ;;  %v2872_v43 = vld [vmem:[%s4376_s1 + $0x3ac] sm:$0xf] }
  0x94   :  { %1416 = vmatpush.bf16.msra.mxu0 %v2430_v33  ;;  %v2940_v33 = vld [vmem:[%s4376_s1 + $0x5cc] sm:$0xf]  ;;  %v2338_v53 = vor.u32 %v2872_v43, %v2335_v46  ;;  %v2191_v55 = vld [vmem:[%s4376_s1 + $0x298] sm:$0xf0] }
  0x95   :  { %1429 = vmatpush.bf16.msra.mxu1 %v2558_v34  ;;  %v2607_v34 = vld [vmem:[%s4376_s1 + $0x5d8] sm:$0xf0]  ;;  %v2904_v48 = vld [vmem:[%s4376_s1 + $0x4ac] sm:$0xf] }
  0x96   :  { %1442 = vmatpush.bf16.msra.mxu2 %v1922_v36  ;;  %v2226_v36 = vor.u32 %v2844_v25, %v2223_v26  ;;  %v2610_v45 = vor.u32 %v2940_v33, %v2607_v34  ;;  %v2466_v54 = vor.u32 %v2904_v48, %v2463_v49  ;;  %v2900_v58 = vld [vmem:[%s4376_s1 + $0x48c] sm:$0xf]  ;;  %v2447_v59 = vld [vmem:[%s4376_s1 + $0x498] sm:$0xf0] }
  0x97   :  { %1455 = vmatpush.bf16.msra.mxu3 %v2050_v42  ;;  %v2207_v42 = vld [vmem:[%s4376_s1 + $0x2b8] sm:$0xf0]  ;;  %v2932_v60 = vld [vmem:[%s4376_s1 + $0x58c] sm:$0xf]  ;;  %v2450_v0 = vor.u32 %v2900_v58, %v2447_v59 }
  0x98   :  { %1417 = vmatpush.bf16.msra.mxu0 %v2414_v50  ;;  %v2936_v50 = vld [vmem:[%s4376_s1 + $0x5ac] sm:$0xf]  ;;  %v2575_v61 = vld [vmem:[%s4376_s1 + $0x598] sm:$0xf0] }
  0x99   :  { %1430 = vmatpush.bf16.msra.mxu1 %v2542_v51  ;;  %v2591_v51 = vld [vmem:[%s4376_s1 + $0x5b8] sm:$0xf0]  ;;  %v2864_v3 = vld [vmem:[%s4376_s1 + $0x36c] sm:$0xf]  ;;  %v2578_v4 = vor.u32 %v2932_v60, %v2575_v61 }
  0x9a   :  { %1443 = vmatpush.bf16.msra.mxu2 %v1906_v52  ;;  %v2210_v52 = vor.u32 %v2840_v41, %v2207_v42  ;;  %v2594_v57 = vor.u32 %v2936_v50, %v2591_v51  ;;  %v2303_v5 = vld [vmem:[%s4376_s1 + $0x378] sm:$0xf0]  ;;  %v2928_v8 = vld [vmem:[%s4376_s1 + $0x56c] sm:$0xf] }
  0x9b   :  { %1456 = vmatpush.bf16.msra.mxu3 %v2034_v56  ;;  %v2868_v56 = vld [vmem:[%s4376_s1 + $0x38c] sm:$0xf]  ;;  %v2431_v7 = vld [vmem:[%s4376_s1 + $0x478] sm:$0xf0]  ;;  %v2306_v11 = vor.u32 %v2864_v3, %v2303_v5  ;;  %v2961_v3 = vld [vmem:[%s4378_s3 + $0x70] sm:$0xff] }
  0x9c   :  { %1418 = vmatpush.bf16.msra.mxu0 %v2398_v62  ;;  %v2559_v9 = vld [vmem:[%s4376_s1 + $0x578] sm:$0xf0]  ;;  %v2860_v15 = vld [vmem:[%s4376_s1 + $0x34c] sm:$0xf] }
  0x9d   :  { %1431 = vmatpush.bf16.msra.mxu1 %v2526_v1  ;;  %v2832_v1 = vld [vmem:[%s4376_s1 + $0x26c] sm:$0xf]  ;;  %v2159_v14 = vld [vmem:[%s4376_s1 + $0x258] sm:$0xf0]  ;;  %v2562_v16 = vor.u32 %v2928_v8, %v2559_v9  ;;  %v2959_v9 = vld [vmem:[%s4378_s3 + $0x60] sm:$0xff] }
  0x9e   :  { %1444 = vmatpush.bf16.msra.mxu2 %v1890_v2  ;;  %v2175_v2 = vld [vmem:[%s4376_s1 + $0x278] sm:$0xf0]  ;;  %v2924_v20 = vld [vmem:[%s4376_s1 + $0x54c] sm:$0xf] }
  0x9f   :  { %1457 = vmatpush.bf16.msra.mxu3 %v2018_v6  ;;  %v2896_v6 = vld [vmem:[%s4376_s1 + $0x46c] sm:$0xf]  ;;  %v2178_v10 = vor.u32 %v2832_v1, %v2175_v2  ;;  %v2415_v19 = vld [vmem:[%s4376_s1 + $0x458] sm:$0xf0]  ;;  %v2953_v1 = vld [vmem:[%s4378_s3 + $0x30] sm:$0xff] }
  0xa0   :  { %1419 = vmatpush.bf16.msra.mxu0 %v2382_v13  ;;  %v2434_v12 = vor.u32 %v2896_v6, %v2431_v7  ;;  %v2828_v13 = vld [vmem:[%s4376_s1 + $0x24c] sm:$0xf]  ;;  %v2143_v26 = vld [vmem:[%s4376_s1 + $0x238] sm:$0xf0] }
  0xa1   :  { %1432 = vmatpush.bf16.msra.mxu1 %v2510_v17  ;;  %v2287_v17 = vld [vmem:[%s4376_s1 + $0x358] sm:$0xf0]  ;;  %v2856_v27 = vld [vmem:[%s4376_s1 + $0x32c] sm:$0xf] }
  0xa2   :  { %1445 = vmatpush.bf16.msra.mxu2 %v1874_v18  ;;  %v2892_v18 = vld [vmem:[%s4376_s1 + $0x44c] sm:$0xf]  ;;  %v2271_v30 = vld [vmem:[%s4376_s1 + $0x338] sm:$0xf0] }
  0xa3   :  { %1458 = vmatpush.bf16.msra.mxu3 %v2002_v21  ;;  %1420 = vmatmul.bf16.vlgmr.msra.gmra.mxu0 %v3514_v35  ;;  %v2543_v21 = vld [vmem:[%s4376_s1 + $0x558] sm:$0xf0]  ;;  %v2418_v25 = vor.u32 %v2892_v18, %v2415_v19  ;;  %v2888_v32 = vld [vmem:[%s4376_s1 + $0x42c] sm:$0xf]  ;;  %v2274_v42 = vor.u32 %v2856_v27, %v2271_v30  ;;  %v2957_v18 = vld [vmem:[%s4378_s3 + $0x50] sm:$0xff] }
  0xa4   :  { %1464 = vmatpush.bf16.msrb.mxu0 %v2242_v22  ;;  %1433 = vmatmul.bf16.vlgmr.msra.gmra.mxu1 %v3522_v39  ;;  %v2162_v22 = vor.u32 %v2828_v13, %v2159_v14  ;;  %v2546_v29 = vor.u32 %v2924_v20, %v2543_v21  ;;  %v2399_v33 = vld [vmem:[%s4376_s1 + $0x438] sm:$0xf0]  ;;  %v2920_v34 = vld [vmem:[%s4376_s1 + $0x52c] sm:$0xf] }
  0xa5   :  { %1477 = vmatpush.bf16.msrb.mxu1 %v2370_v23  ;;  %1446 = vmatmul.bf16.vlgmr.msra.gmra.mxu2 %v3382_v31  ;;  %v2836_v31 = vld [vmem:[%s4376_s1 + $0x28c] sm:$0xf]  ;;  %v2402_v43 = vor.u32 %v2888_v32, %v2399_v33  ;;  %v2127_v46 = vld [vmem:[%s4376_s1 + $0x218] sm:$0xf0] }
  0xa6   :  { %1490 = vmatpush.bf16.msrb.mxu2 %v2498_v24  ;;  %1459 = vmatmul.bf16.vlgmr.msra.gmra.mxu3 %v3405_v44  ;;  %v2319_v44 = vld [vmem:[%s4376_s1 + $0x398] sm:$0xf0]  ;;  %v2194_v62 = vor.u32 %v2836_v31, %v2191_v55  ;;  %v2824_v23 = vld [vmem:[%s4376_s1 + $0x22c] sm:$0xf]  ;;  %v2290_v24 = vor.u32 %v2860_v15, %v2287_v17 }
  0xa7   :  { %1503 = vmatpush.bf16.msrb.mxu3 %v2626_v28  ;;  %v2322_v63 = vor.u32 %v2868_v56, %v2319_v44  ;;  %v4224_v28 = vld [vmem:[%s4377_s2] sm:$0xf]  ;;  %v2852_v48 = vld [vmem:[%s4376_s1 + $0x30c] sm:$0xf]  ;;  %v2255_v51 = vld [vmem:[%s4376_s1 + $0x318] sm:$0xf0] }
  0xa8   :  { %1465 = vmatpush.bf16.msrb.mxu0 %v2226_v36  ;;  %v2527_v36 = vld [vmem:[%s4376_s1 + $0x538] sm:$0xf0]  ;;  %v236_v41 = vperm.slane %v4224_v28, 0  ;;  %v2952_v5 = vld [vmem:[%s4378_s3 + $0x28] sm:$0xff]  ;;  %v237_v30 = vperm.slane %v4224_v28, 1  ;;  %s1842_s2 = sshll.u32 %s3027_s11, 4  ;;  %s1843_s2 = int_to_ptr.vmem [resolvable:$true] %s1842_s2 }
  0xa9   :  { %1478 = vmatpush.bf16.msrb.mxu1 %v2354_v37  ;;  %v2530_v50 = vor.u32 %v2920_v34, %v2527_v36  ;;  %v2511_v31 = vld [vmem:[%s4376_s1 + $0x518] sm:$0xf0]  ;;  %v2948_v20 = vld [vmem:[%s4378_s3 + $0x8] sm:$0xff]  ;;  %v2969_v36 = vld [vmem:[%s4378_s3 + $0xb0] sm:$0xff] }
  0xaa   :  { %1491 = vmatpush.bf16.msrb.mxu2 %v2482_v40  ;;  %v2146_v40 = vor.u32 %v2824_v23, %v2143_v26  ;;  %v2954_v59 = vld [vmem:[%s4378_s3 + $0x38] sm:$0xff]  ;;  %v2956_v21 = vld [vmem:[%s4378_s3 + $0x48] sm:$0xff] }
  0xab   :  { %1504 = vmatpush.bf16.msrb.mxu3 %v2610_v45  ;;  %v2820_v45 = vld [vmem:[%s4376_s1 + $0x20c] sm:$0xf]  ;;  %v2970_v26 = vld [vmem:[%s4378_s3 + $0xb8] sm:$0xff] }
  0xac   :  { %1466 = vmatpush.bf16.msrb.mxu0 %v2210_v52  ;;  %v2884_v52 = vld [vmem:[%s4376_s1 + $0x40c] sm:$0xf]  ;;  %v2130_v55 = vor.u32 %v2820_v45, %v2127_v46 }
  0xad   :  { %1479 = vmatpush.bf16.msrb.mxu1 %v2338_v53  ;;  %v2383_v53 = vld [vmem:[%s4376_s1 + $0x418] sm:$0xf0] }
  0xae   :  { %1492 = vmatpush.bf16.msrb.mxu2 %v2466_v54  ;;  %v2916_v54 = vld [vmem:[%s4376_s1 + $0x50c] sm:$0xf]  ;;  %v2386_v44 = vor.u32 %v2884_v52, %v2383_v53  ;;  %v2966_v52 = vld [vmem:[%s4378_s3 + $0x98] sm:$0xff] }
  0xaf   :  { %1505 = vmatpush.bf16.msrb.mxu3 %v2594_v57  ;;  %v1213_v37 = vpop.f32.mrf.mxu0  ;;  %v2258_v57 = vor.u32 %v2852_v48, %v2255_v51  ;;  %v2514_v58 = vor.u32 %v2916_v54, %v2511_v31  ;;  %v2967_v48 = vld [vmem:[%s4378_s3 + $0xa0] sm:$0xff] }
  0xb0   :  { %1467 = vmatpush.bf16.msrb.mxu0 %v2194_v62  ;;  %v1214_v56 = vadd.f32 %v1213_v37, %v236_v41  ;;  %v2962_v62 = vld [vmem:[%s4378_s3 + $0x78] sm:$0xff]  ;;  %v2968_v41 = vld [vmem:[%s4378_s3 + $0xa8] sm:$0xff] }
  0xb1   :  { %1480 = vmatpush.bf16.msrb.mxu1 %v2322_v63  ;;  %v1226_v49 = vpop.f32.mrf.mxu1 }
  0xb2   :  { %1493 = vmatpush.bf16.msrb.mxu2 %v2450_v0  ;;  %v1227_v63 = vadd.f32 %v1226_v49, %v1214_v56 }
  0xb3   :  { %1506 = vmatpush.bf16.msrb.mxu3 %v2578_v4 }
  0xb4   :  { %1468 = vmatpush.bf16.msrb.mxu0 %v2178_v10 }
  0xb5   :  { %1481 = vmatpush.bf16.msrb.mxu1 %v2306_v11  ;;  %v2950_v11 = vld [vmem:[%s4378_s3 + $0x18] sm:$0xff] }
  0xb6   :  { %1494 = vmatpush.bf16.msrb.mxu2 %v2434_v12  ;;  %v1239_v60 = vpop.f32.mrf.mxu2  ;;  %v2958_v12 = vld [vmem:[%s4378_s3 + $0x58] sm:$0xff] }
  0xb7   :  { %1507 = vmatpush.bf16.msrb.mxu3 %v2562_v16  ;;  %v1215_v61 = vpop.f32.mrf.mxu0  ;;  %v1240_v4 = vadd.f32 %v1239_v60, %v1227_v63  ;;  %v2949_v16 = vld [vmem:[%s4378_s3 + $0x10] sm:$0xff]  ;;  %v2963_v63 = vld [vmem:[%s4378_s3 + $0x80] sm:$0xff] }
  0xb8   :  { %1469 = vmatpush.bf16.msrb.mxu0 %v2162_v22  ;;  %v1252_v2 = vpop.f32.mrf.mxu3 }
  0xb9   :  { %1482 = vmatpush.bf16.msrb.mxu1 %v2290_v24  ;;  %v1228_v0 = vpop.f32.mrf.mxu1  ;;  %v1253_v7 = vadd.f32 %v1252_v2, %v1240_v4  ;;  %v2947_v24 = vld [vmem:[%s4378_s3] sm:$0xff]  ;;  %v2977_v2 = vld [vmem:[%s4378_s3 + $0xf0] sm:$0xff] }
  0xba   :  { %1495 = vmatpush.bf16.msrb.mxu2 %v2418_v25  ;;  %v2955_v25 = vld [vmem:[%s4378_s3 + $0x40] sm:$0xff]  ;;  %v238_v0 = vperm.slane %v4224_v28, 2 }
  0xbb   :  { %1508 = vmatpush.bf16.msrb.mxu3 %v2546_v29 }
  0xbc   :  { %1470 = vmatpush.bf16.msrb.mxu0 %v2146_v40 }
  0xbd   :  { %1483 = vmatpush.bf16.msrb.mxu1 %v2274_v42 }
  0xbe   :  { %1496 = vmatpush.bf16.msrb.mxu2 %v2402_v43  ;;  %v1241_v6 = vpop.f32.mrf.mxu2 }
  0xbf   :  { %1509 = vmatpush.bf16.msrb.mxu3 %v2530_v50  ;;  %v2976_v6 = vld [vmem:[%s4378_s3 + $0xe8] sm:$0xff] }
  0xc0   :  { %1471 = vmatpush.bf16.msrb.mxu0 %v2130_v55  ;;  %v1265_v8 = vpop.f32.mrf.mxu0 }
  0xc1   :  { %1484 = vmatpush.bf16.msrb.mxu1 %v2258_v57  ;;  %v1266_v10 = vadd.f32 %v1265_v8, %v1253_v7 }
  0xc2   :  { %1497 = vmatpush.bf16.msrb.mxu2 %v2386_v44  ;;  %v2965_v44 = vld [vmem:[%s4378_s3 + $0x90] sm:$0xff] }
  0xc3   :  { %1510 = vmatpush.bf16.msrb.mxu3 %v2514_v58  ;;  %1472 = vmatmul.bf16.vlgmr.msrb.gmra.mxu0 %v3393_v38  ;;  %v2960_v38 = vld [vmem:[%s4378_s3 + $0x68] sm:$0xff] }
  0xc4   :  { %1784 = vmatpush.bf16.msra.mxu0 %v2954_v59  ;;  %1485 = vmatmul.bf16.vlgmr.msrb.gmra.mxu1 %v3414_v47  ;;  %v2951_v47 = vld [vmem:[%s4378_s3 + $0x20] sm:$0xff]  ;;  %v2964_v58 = vld [vmem:[%s4378_s3 + $0x88] sm:$0xff] }
  0xc5   :  { %1797 = vmatpush.bf16.msra.mxu1 %v2962_v62  ;;  %1498 = vmatmul.bf16.vlgmr.msrb.gmra.mxu2 %v3514_v35  ;;  %v1254_v35 = vpop.f32.mrf.mxu3 }
  0xc6   :  { %1511 = vmatmul.bf16.vlgmr.msrb.gmra.mxu3 %v3522_v39  ;;  %v1278_v39 = vpop.f32.mrf.mxu1  ;;  %1810 = vmatpush.bf16.msra.mxu2 %v2970_v26 }
  0xc7   :  { %v1279_v13 = vadd.f32 %v1278_v39, %v1266_v10  ;;  %v2974_v39 = vld [vmem:[%s4378_s3 + $0xd8] sm:$0xff] }
  0xc8   :  { %1785 = vmatpush.bf16.msra.mxu0 %v2953_v1  ;;  %v1291_v14 = vpop.f32.mrf.mxu2  ;;  %v1267_v15 = vpop.f32.mrf.mxu0  ;;  %v2978_v1 = vld [vmem:[%s4378_s3 + $0xf8] sm:$0xff] }
  0xc9   :  { %1798 = vmatpush.bf16.msra.mxu1 %v2961_v3  ;;  %2993 = vtanh.f32 %v1279_v13  ;;  %v1292_v32 = vadd.f32 %v1291_v14, %v237_v30  ;;  %1823 = vmatpush.bf16.msra.mxu3 %v2978_v1 }
  0xca   :  { %1811 = vmatpush.bf16.msra.mxu2 %v2969_v36 }
  0xcc   :  { %1786 = vmatpush.bf16.msra.mxu0 %v2952_v5 }
  0xcd   :  { %1799 = vmatpush.bf16.msra.mxu1 %v2960_v38  ;;  %v1304_v19 = vpop.f32.mrf.mxu3  ;;  %1824 = vmatpush.bf16.msra.mxu3 %v2977_v2 }
  0xce   :  { %v1280_v17 = vpop.f32.mrf.mxu1  ;;  %v1305_v33 = vadd.f32 %v1304_v19, %v1292_v32  ;;  %1812 = vmatpush.bf16.msra.mxu2 %v2968_v41 }
  0xcf   :  { %v2994_v23 = vpop.eup %2993  ;;  %v2972_v17 = vld [vmem:[%s4378_s3 + $0xc8] sm:$0xff] }
  0xd0   :  { %1787 = vmatpush.bf16.msra.mxu0 %v2951_v47  ;;  %v1293_v22 = vpop.f32.mrf.mxu2  ;;  %v1520_v29 = vpack.c.bf16 %v2994_v23, %v2994_v23  ;;  %v2975_v47 = vld [vmem:[%s4378_s3 + $0xe0] sm:$0xff]  ;;  %v239_v23 = vperm.slane %v4224_v28, 3 }
  0xd1   :  { %1800 = vmatpush.bf16.msra.mxu1 %v2959_v9  ;;  %1825 = vmatpush.bf16.msra.mxu3 %v2976_v6 }
  0xd2   :  { %1813 = vmatpush.bf16.msra.mxu2 %v2967_v48  ;;  %v2980_v48 = vld [vmem:[%s4379_s4] ss:$0 sm:$0xff] }
  0xd4   :  { %1788 = vmatpush.bf16.msra.mxu0 %v2950_v11 }
  0xd5   :  { %1801 = vmatpush.bf16.msra.mxu1 %v2958_v12  ;;  %v1306_v27 = vpop.f32.mrf.mxu3  ;;  %1826 = vmatpush.bf16.msra.mxu3 %v2975_v47  ;;  %v2973_v12 = vld [vmem:[%s4378_s3 + $0xd0] sm:$0xff] }
  0xd6   :  { %1814 = vmatpush.bf16.msra.mxu2 %v2966_v52 }
  0xd8   :  { %1789 = vmatpush.bf16.msra.mxu0 %v2949_v16 }
  0xd9   :  { %1802 = vmatpush.bf16.msra.mxu1 %v2957_v18  ;;  %1827 = vmatpush.bf16.msra.mxu3 %v2974_v39 }
  0xda   :  { %1815 = vmatpush.bf16.msra.mxu2 %v2965_v44 }
  0xdc   :  { %1790 = vmatpush.bf16.msra.mxu0 %v2948_v20  ;;  %v2971_v20 = vld [vmem:[%s4378_s3 + $0xc0] sm:$0xff] }
  0xdd   :  { %1803 = vmatpush.bf16.msra.mxu1 %v2956_v21  ;;  %1828 = vmatpush.bf16.msra.mxu3 %v2973_v12 }
  0xde   :  { %1816 = vmatpush.bf16.msra.mxu2 %v2964_v58 }
  0xe0   :  { %1791 = vmatpush.bf16.msra.mxu0 %v2947_v24  ;;  %v1317_v34 = vpop.f32.mrf.mxu0 }
  0xe1   :  { %1804 = vmatpush.bf16.msra.mxu1 %v2955_v25  ;;  %v1318_v37 = vadd.f32 %v1317_v34, %v1305_v33  ;;  %v1330_v40 = vpop.f32.mrf.mxu1  ;;  %1829 = vmatpush.bf16.msra.mxu3 %v2972_v17 }
  0xe2   :  { %1817 = vmatpush.bf16.msra.mxu2 %v2963_v63 }
  0xe3   :  { %1792 = vmatmul.bf16.vlgmr.msra.gmra.mxu0 %v1520_v29  ;;  %v1331_v42 = vadd.f32 %v1330_v40, %v1318_v37 }
  0xe5   :  { %1830 = vmatpush.bf16.msra.mxu3 %v2971_v20 }
  0xe8   :  { %v1343_v43 = vpop.f32.mrf.mxu2  ;;  %v1319_v50 = vpop.f32.mrf.mxu0 }
  0xe9   :  { %v1344_v45 = vadd.f32 %v1343_v43, %v1331_v42  ;;  %v1356_v46 = vpop.f32.mrf.mxu3  ;;  %v1332_v51 = vpop.f32.mrf.mxu1 }
  0xeb   :  { %v1357_v49 = vadd.f32 %v1356_v46, %v1344_v45 }
  0xed   :  { %2995 = vtanh.f32 %v1357_v49 }
  0xf0   :  { %v1345_v53 = vpop.f32.mrf.mxu2 }
  0xf1   :  { %v1358_v54 = vpop.f32.mrf.mxu3 }
  0xf3   :  { %v2996_v31 = vpop.eup %2995 }
  0xf4   :  { %v1521_v55 = vpack.c.bf16 %v2996_v31, %v2996_v31 }
  0xf6   :  { %1805 = vmatmul.bf16.vlgmr.msra.gmra.mxu1 %v1521_v55 }
 0x100   :  { %v1369_v56 = vpop.f32.mrf.mxu0 }
 0x101   :  { %v1382_v57 = vpop.f32.mrf.mxu1  ;;  %v1370_v3 = vadd.f32 %v1369_v56, %v238_v0 }
 0x103   :  { %v1383_v38 = vadd.f32 %v1382_v57, %v1370_v3 }
 0x108   :  { %v1395_v59 = vpop.f32.mrf.mxu2  ;;  %v1371_v60 = vpop.f32.mrf.mxu0 }
 0x109   :  { %v1408_v61 = vpop.f32.mrf.mxu3  ;;  %v1384_v62 = vpop.f32.mrf.mxu1  ;;  %v1396_v7 = vadd.f32 %v1395_v59, %v1383_v38 }
 0x10b   :  { %v1409_v8 = vadd.f32 %v1408_v61, %v1396_v7 }
 0x110   :  { %v1397_v4 = vpop.f32.mrf.mxu2 }
 0x111   :  { %v1410_v5 = vpop.f32.mrf.mxu3 }
 0x120   :  { %v1421_v35 = vpop.f32.mrf.mxu0 }
 0x121   :  { %v1422_v9 = vadd.f32 %v1421_v35, %v1409_v8  ;;  %v1434_v10 = vpop.f32.mrf.mxu1 }
 0x123   :  { %v1435_v11 = vadd.f32 %v1434_v10, %v1422_v9 }
 0x125   :  { %2997 = vtanh.f32 %v1435_v11 }
 0x128   :  { %v1447_v13 = vpop.f32.mrf.mxu2  ;;  %v1423_v15 = vpop.f32.mrf.mxu0 }
 0x129   :  { %v1460_v14 = vpop.f32.mrf.mxu3  ;;  %v1436_v16 = vpop.f32.mrf.mxu1  ;;  %v1448_v24 = vadd.f32 %v1447_v13, %v239_v23 }
 0x12b   :  { %v2998_v18 = vpop.eup %2997  ;;  %v1461_v25 = vadd.f32 %v1460_v14, %v1448_v24 }
 0x12c   :  { %v1522_v19 = vpack.c.bf16 %v2998_v18, %v2998_v18 }
 0x12e   :  { %1818 = vmatmul.bf16.vlgmr.msra.gmra.mxu2 %v1522_v19 }
 0x130   :  { %v1449_v21 = vpop.f32.mrf.mxu2 }
 0x131   :  { %v1462_v22 = vpop.f32.mrf.mxu3 }
 0x140   :  { %v1473_v26 = vpop.f32.mrf.mxu0 }
 0x141   :  { %v1486_v27 = vpop.f32.mrf.mxu1  ;;  %v1474_v29 = vadd.f32 %v1473_v26, %v1461_v25 }
 0x143   :  { %v1487_v30 = vadd.f32 %v1486_v27, %v1474_v29 }
 0x148   :  { %v1499_v32 = vpop.f32.mrf.mxu2  ;;  %v1475_v36 = vpop.f32.mrf.mxu0 }
 0x149   :  { %v1500_v33 = vadd.f32 %v1499_v32, %v1487_v30  ;;  %v1512_v34 = vpop.f32.mrf.mxu3  ;;  %v1488_v37 = vpop.f32.mrf.mxu1 }
 0x14b   :  { %v1513_v40 = vadd.f32 %v1512_v34, %v1500_v33 }
 0x14d   :  { %2999 = vtanh.f32 %v1513_v40 }
 0x150   :  { %v1501_v41 = vpop.f32.mrf.mxu2 }
 0x151   :  { %v1514_v42 = vpop.f32.mrf.mxu3 }
 0x153   :  { %v3000_v43 = vpop.eup %2999 }
 0x154   :  { %v1523_v45 = vpack.c.bf16 %v3000_v43, %v3000_v43 }
 0x156   :  { %1831 = vmatmul.bf16.vlgmr.msra.gmra.mxu3 %v1523_v45 }
 0x160   :  { %v1793_v46 = vpop.f32.mrf.mxu0 }
 0x161   :  { %v1794_v49 = vadd.f32 %v2980_v48, %v1793_v46 }
 0x168   :  { %v1795_v28 = vpop.f32.mrf.mxu0 }
 0x173   :  { %v1806_v50 = vpop.f32.mrf.mxu1 }
 0x174   :  { %v1807_v51 = vadd.f32 %v1806_v50, %v1794_v49 }
 0x17b   :  { %v1808_v52 = vpop.f32.mrf.mxu1 }
 0x1b1   :  { %v1819_v53 = vpop.f32.mrf.mxu2 }
 0x1b2   :  { %v1820_v31 = vadd.f32 %v1819_v53, %v1807_v51 }
 0x1b9   :  { %v1821_v54 = vpop.f32.mrf.mxu2 }
 0x1d9   :  { %v1832_v55 = vpop.f32.mrf.mxu3 }
 0x1da   :  { %v1833_v56 = vadd.f32 %v1832_v55, %v1820_v31 }
 0x1dc   :  { %1836 = vst [vmem:[#allocation2] sm:$0xff] %v1833_v56 }
 0x1dd   :  { %1847 = dma.vmem_to_hbm [thread:$0]  %s1843_s2, 128, %s1845_s14, [#allocation3]  }
 0x1e1   :  { %v1834_v57 = vpop.f32.mrf.mxu3 }
 0x1e2   :  { %3025 = dma.done.wait [#allocation3], 128  }
 0x1e3   :  { %3026 = vsyncadd [#allocation3], 4294967168 }
 0x1e4   :  { %1852 = vsyncpa [#allocation3], 1 }

</bundles_post_ra>
